<compile_context>
chip_gen: v5e
topology: v5e:2x2
jax: 0.10.0
libtpu: 0.0.40
codegen_flags: <defaults>
</compile_context>

<pallas_src>
import math
import jax
import jax.numpy as jnp
from jax import lax
from jax.experimental import pallas as pl
from jax.experimental.pallas import tpu as pltpu


def _round_up(x, m):
    return (x + m - 1) // m * m


def _vmem_limit(resident_bytes):
    # Explicit scoped-VMEM limit (default is only 16 MiB on v5e / 32 MiB on v6e & v7x).
    return int(min(max(resident_bytes + (4 << 20), 16 << 20), 64 << 20))


# --------------------------------------------------------------------------------------
# Kernel 1: input projection (all steps, one MXU matmul) + serial recurrence.
# --------------------------------------------------------------------------------------
def _make_recurrent_kernel(T1, B_pad, H_pad, unroll):
    def kernel(emb_ref, wx_ref, wh_ref, bg_ref, hid_ref, xg_ref):
        # ---- Phase 1: Xg[t*B_pad:(t+1)*B_pad, :] = x_t @ Wx + b_gate for ALL time steps ----
        # bf16 operands, f32 accumulation; bias added in f32.
        xg_ref[...] = (jnp.dot(emb_ref[...], wx_ref[...],
                               preferred_element_type=jnp.float32)
                       + bg_ref[...])

        # ---- Phase 2: sequential recurrence (only h @ Wh on the serial path) ----
        def step(t, h):
            r = pl.multiple_of(t * B_pad, B_pad)      # aligned sublane offset
            # NOTE: Wh is re-loaded from VMEM each step (no vreg hoist across the loop:
            # at realistic H it would not fit the 64-vreg file and would spill on the
            # serial critical path).
            g = xg_ref[pl.ds(r, B_pad), :] + jnp.dot(
                h.astype(jnp.bfloat16), wh_ref[...],
                preferred_element_type=jnp.float32)
            ct_tilde = jnp.tanh(g)
            # sigmoid(g) == 0.5*(tanh(g/2)+1): one EUP push instead of exp+recip.
            s = 0.5 * (jnp.tanh(0.5 * g) + 1.0)
            c = h * s + ct_tilde * s                  # faithful quirk: uses h_{t-1}, not C_{t-1}
            h_new = jnp.tanh(c) * s                   # gate math stays f32
            hid_ref[pl.ds(r, B_pad), :] = h_new.astype(jnp.bfloat16)
            return h_new

        lax.fori_loop(0, T1, step,
                      jnp.zeros((B_pad, H_pad), jnp.float32), unroll=unroll)

    return kernel


# --------------------------------------------------------------------------------------
# Kernel 2: vocab projection, tiled over V with a 'parallel' grid axis.
# --------------------------------------------------------------------------------------
def _vocab_kernel(hid_ref, wl_ref, bl_ref, out_ref):
    out_ref[...] = (jnp.dot(hid_ref[...], wl_ref[...],
                            preferred_element_type=jnp.float32)
                    + bl_ref[...])


def decoder_forward_pallas(features, captions, lengths, params):
    """features: (B, E) f32, captions: (B, T) int32, lengths: static python list (sorted desc)."""
    embed_w = params["embed_w"]          # (V, E)
    wx = params["wx"]                    # (E, H)
    wh = params["wh"]                    # (H, H)
    bg = params["bg"]                    # (1, H)
    wl = params["wl"]                    # (H, V)
    bl = params["bl"]                    # (1, V)

    B, E = features.shape
    T = captions.shape[1]
    H = wh.shape[0]
    V = wl.shape[1]
    T1 = T + 1

    # pack_padded_sequence preconditions (static python list, sorted descending, <= T+1)
    lengths = [int(l) for l in lengths]
    assert len(lengths) == B, "one length per batch row"
    assert all(lengths[i] >= lengths[i + 1] for i in range(len(lengths) - 1)), \
        "lengths must be sorted descending"
    assert max(lengths) <= T1, "lengths must be <= T+1"

    # hardware-tile padding: bf16-stored hiddens -> 16 sublanes; lanes -> 128
    B_pad = _round_up(max(B, 16), 16)
    E_pad = _round_up(E, 128)
    H_pad = _round_up(H, 128)
    # Vocab tile width: multiples of 256 where possible (v6e/v7x MXU is 2x256x256).
    V_pad = _round_up(V, 128)
    if V_pad >= 512:
        TN = 512
        V_pad = _round_up(V_pad, TN)
    elif V_pad >= 256:
        TN = 256
    else:
        TN = V_pad
    M = T1 * B_pad                      # flattened (time, batch) rows; multiple of 16

    # ---- plain-JAX glue: embedding lookup + prepend features, time-major, zero-pad ----
    emb = jnp.take(embed_w, captions, axis=0)                       # (B, T, E)
    emb = jnp.concatenate([features[:, None, :], emb], axis=1)      # (B, T+1, E)
    emb_tm = jnp.transpose(emb, (1, 0, 2)).astype(jnp.bfloat16)     # (T+1, B, E) bf16 operands
    emb_p = jnp.zeros((T1, B_pad, E_pad), jnp.bfloat16).at[:, :B, :E].set(emb_tm)
    emb_flat = emb_p.reshape(M, E_pad)                              # (T1*B_pad, E_pad) bf16

    wx_p = jnp.zeros((E_pad, H_pad), jnp.bfloat16).at[:E, :H].set(wx.astype(jnp.bfloat16))
    wh_p = jnp.zeros((H_pad, H_pad), jnp.bfloat16).at[:H, :H].set(wh.astype(jnp.bfloat16))
    bg_p = jnp.zeros((1, H_pad), jnp.float32).at[:, :H].set(bg)
    wl_p = jnp.zeros((H_pad, V_pad), jnp.bfloat16).at[:H, :V].set(wl.astype(jnp.bfloat16))
    bl_p = jnp.zeros((1, V_pad), jnp.float32).at[:, :V].set(bl)

    full2d = lambda i: (0, 0)
    # Cap the unroll: full unroll only for short sequences (review: bundle bloat / vreg
    # pressure for T1 ~ 20-64).
    unroll = T1 if T1 <= 16 else 8

    # ---- Call 1: recurrent kernel (grid=(1,); the loop lives in-kernel) ----
    res1 = (2 * (M * E_pad * 2 + E_pad * H_pad * 2 + H_pad * H_pad * 2 + H_pad * 4
                 + M * H_pad * 2) + M * H_pad * 4)
    cost1 = pl.CostEstimate(
        flops=2 * M * E_pad * H_pad + 2 * T1 * B_pad * H_pad * H_pad + 10 * M * H_pad,
        transcendentals=3 * M * H_pad,
        bytes_accessed=(M * E_pad * 2 + E_pad * H_pad * 2 + H_pad * H_pad * 2
                        + H_pad * 4 + M * H_pad * 2))
    hiddens = pl.pallas_call(
        _make_recurrent_kernel(T1, B_pad, H_pad, unroll),
        out_shape=jax.ShapeDtypeStruct((M, H_pad), jnp.bfloat16),
        grid=(1,),
        in_specs=[
            pl.BlockSpec((M, E_pad), full2d),        # embeddings (bf16), time-major flattened
            pl.BlockSpec((E_pad, H_pad), full2d),    # Wx (bf16)
            pl.BlockSpec((H_pad, H_pad), full2d),    # Wh (bf16)
            pl.BlockSpec((1, H_pad), full2d),        # gate bias (f32)
        ],
        out_specs=pl.BlockSpec((M, H_pad), full2d),  # hiddens, stored bf16
        scratch_shapes=[pltpu.VMEM((M, H_pad), jnp.float32)],   # Xg (f32, all steps)
        compiler_params=pltpu.CompilerParams(
            dimension_semantics=("arbitrary",),
            vmem_limit_bytes=_vmem_limit(res1)),
        cost_estimate=cost1,
    )(emb_flat, wx_p, wh_p, bg_p)                    # (M, H_pad) bf16

    # ---- Call 2: vocab projection, V-tiled, 'parallel' axis (shards across v7x's 2 TCs;
    #      Wl tiles stream through VMEM, DMA overlapped with MXU work by auto-pipelining) ----
    n_v = V_pad // TN
    res2 = 2 * (M * H_pad * 2 + H_pad * TN * 2 + TN * 4 + M * TN * 4)
    cost2 = pl.CostEstimate(
        flops=2 * M * H_pad * V_pad,
        transcendentals=0,
        bytes_accessed=M * H_pad * 2 + H_pad * V_pad * 2 + V_pad * 4 + M * V_pad * 4)
    logits_flat = pl.pallas_call(
        _vocab_kernel,
        out_shape=jax.ShapeDtypeStruct((M, V_pad), jnp.float32),
        grid=(n_v,),
        in_specs=[
            pl.BlockSpec((M, H_pad), lambda j: (0, 0)),   # hiddens (bf16), reused every tile
            pl.BlockSpec((H_pad, TN), lambda j: (0, j)),  # Wl tile (bf16)
            pl.BlockSpec((1, TN), lambda j: (0, j)),      # bias tile (f32)
        ],
        out_specs=pl.BlockSpec((M, TN), lambda j: (0, j)),  # lane-dense f32 output tile
        compiler_params=pltpu.CompilerParams(
            dimension_semantics=("parallel",),
            vmem_limit_bytes=_vmem_limit(res2)),
        cost_estimate=cost2,
    )(hiddens, wl_p, bl_p)                                  # (M, V_pad) f32

    # ---- pack_padded_sequence(batch_first=True).data as ONE static gather ----
    logits_tm = logits_flat.reshape(T1, B_pad, V_pad)[:, :B, :V]     # (T+1, B, V)
    flat = logits_tm.reshape(T1 * B, V)
    idx = [t * B + b for t in range(max(lengths)) for b in range(B) if lengths[b] > t]
    return jnp.take(flat, jnp.asarray(idx, jnp.int32), axis=0)       # (sum(lengths), V)


# --------------------------------------------------------------------------------------
# References for correctness checking.
# --------------------------------------------------------------------------------------
def decoder_forward_ref(features, captions, lengths, params):
    """Pure-JAX f32 reference mirroring the PyTorch code."""
    embed_w, wx, wh, bg, wl, bl = (params["embed_w"], params["wx"], params["wh"],
                                   params["bg"], params["wl"], params["bl"])
    B, E = features.shape
    H = wh.shape[0]
    emb = jnp.take(embed_w, captions, axis=0)
    emb = jnp.concatenate([features[:, None, :], emb], axis=1)       # (B, T+1, E)
    h = jnp.zeros((B, H), jnp.float32)
    outs = []
    for t in range(emb.shape[1]):
        x = emb[:, t, :]
        g = x @ wx + h @ wh + bg
        s = jax.nn.sigmoid(g)
        c = h * s + jnp.tanh(g) * s
        h = jnp.tanh(c) * s
        outs.append(h @ wl + bl)
    logits = jnp.stack(outs, axis=0)                                 # (T+1, B, V)
    pieces = []
    for t in range(max(lengths)):
        count = sum(1 for L in lengths if L > t)
        pieces.append(logits[t, :count, :])
    return jnp.concatenate(pieces, axis=0)


def decoder_forward_matched_ref(features, captions, lengths, params):
    """Pure-JAX reference applying the SAME bf16 matmul-operand casts as the kernel
    (f32 accumulation, f32 gate math, bf16-stored hiddens) -- tight check of kernel math."""
    embed_w, wx, wh, bg, wl, bl = (params["embed_w"], params["wx"], params["wh"],
                                   params["bg"], params["wl"], params["bl"])
    B, E = features.shape
    H = wh.shape[0]
    emb = jnp.take(embed_w, captions, axis=0)
    emb = jnp.concatenate([features[:, None, :], emb], axis=1).astype(jnp.bfloat16)
    wx_b, wh_b, wl_b = (wx.astype(jnp.bfloat16), wh.astype(jnp.bfloat16),
                        wl.astype(jnp.bfloat16))
    h = jnp.zeros((B, H), jnp.float32)
    outs = []
    for t in range(emb.shape[1]):
        x = emb[:, t, :]
        g = (jnp.dot(x, wx_b, preferred_element_type=jnp.float32)
             + jnp.dot(h.astype(jnp.bfloat16), wh_b, preferred_element_type=jnp.float32)
             + bg)
        s = 0.5 * (jnp.tanh(0.5 * g) + 1.0)
        c = h * s + jnp.tanh(g) * s
        h = jnp.tanh(c) * s
        h_bf = h.astype(jnp.bfloat16)
        outs.append(jnp.dot(h_bf, wl_b, preferred_element_type=jnp.float32) + bl)
    logits = jnp.stack(outs, axis=0)
    pieces = []
    for t in range(max(lengths)):
        count = sum(1 for L in lengths if L > t)
        pieces.append(logits[t, :count, :])
    return jnp.concatenate(pieces, axis=0)


def init_params(key, embed_size, hidden_size, vocab_size):
    """Deterministic synthetic parameters matching the module's shapes."""
    k0, k1, k2, k3, k4 = jax.random.split(key, 5)
    E, H, V = embed_size, hidden_size, vocab_size
    embed_w = jax.random.normal(k0, (V, E), jnp.float32)             # nn.Embedding: N(0,1)
    bnd_g = 1.0 / math.sqrt(E + H)
    w_gate = jax.random.uniform(k1, (H, E + H), jnp.float32, -bnd_g, bnd_g)
    b_gate = jax.random.uniform(k2, (H,), jnp.float32, -bnd_g, bnd_g)
    bnd_l = 1.0 / math.sqrt(H)
    w_lin = jax.random.uniform(k3, (V, H), jnp.float32, -bnd_l, bnd_l)
    b_lin = jax.random.uniform(k4, (V,), jnp.float32, -bnd_l, bnd_l)
    # Split / transpose for the kernel: gate(cat(x,h)) = x @ Wx + h @ Wh + b
    return {
        "embed_w": embed_w,
        "wx": w_gate[:, :E].T,            # (E, H)
        "wh": w_gate[:, E:].T,            # (H, H)
        "bg": b_gate[None, :],            # (1, H)
        "wl": w_lin.T,                    # (H, V)
        "bl": b_lin[None, :],             # (1, V)
    }
    # TODO(synk): LSTMCell also defines self.output = nn.Linear(hidden, input) which is
    # never used in forward(), so it is intentionally not instantiated here.


if __name__ == "__main__":
    B, T = 2, 8
    embed_size, hidden_size, vocab_size = 32, 32, 40

    key = jax.random.PRNGKey(0)
    kp, kf, kc = jax.random.split(key, 3)
    params = init_params(kp, embed_size, hidden_size, vocab_size)

    features = jax.random.normal(kf, (B, embed_size), jnp.float32)       # (2, 32)
    captions = jax.random.randint(kc, (B, T), 0, vocab_size, jnp.int32)  # (2, 8)
    lengths = [9, 7]   # sorted descending, <= T+1 (pack_padded_sequence semantics)

    out = decoder_forward_pallas(features, captions, lengths, params)
    out = jax.block_until_ready(out)

    ref_match = decoder_forward_matched_ref(features, captions, lengths, params)
    ref_f32 = decoder_forward_ref(features, captions, lengths, params)

    assert out.shape == (sum(lengths), vocab_size), out.shape
    # Tight check vs a reference using the same bf16-operand / f32-accumulation scheme.
    assert jnp.allclose(out, ref_match, atol=2e-3, rtol=2e-3), "mismatch vs bf16-matched reference"
    # Looser check vs the pure-f32 PyTorch-equivalent reference (bf16 MXU operands).
    assert jnp.allclose(out, ref_f32, atol=5e-2, rtol=5e-2), "mismatch vs f32 reference"

    print("KERNEL_OK")
</pallas_src>

<mosaic_0001>
module attributes {stable_mosaic.version = 11 : i64} {
  func.func @kernel(%arg0: i32, %arg1: memref<144x128xbf16, #tpu.memory_space<vmem>>, %arg2: memref<128x128xbf16, #tpu.memory_space<vmem>>, %arg3: memref<128x128xbf16, #tpu.memory_space<vmem>>, %arg4: memref<1x128xf32, #tpu.memory_space<vmem>>, %arg5: memref<144x128xbf16, #tpu.memory_space<vmem>>, %arg6: memref<144x128xf32, #tpu.memory_space<vmem>>) attributes {dimension_semantics = [#tpu.dimension_semantics<arbitrary>], iteration_bounds = array<i64: 1>, scalar_prefetch = 0 : i64, scratch_operands = 1 : i64, tpu.core_type = #tpu.core_type<tc>, window_params = [{pipeline_mode = #tpu.pipeline_mode<synchronous>, transform_indices = @transform_0, window_bounds = array<i64: 144, 128>}, {pipeline_mode = #tpu.pipeline_mode<synchronous>, transform_indices = @transform_1, window_bounds = array<i64: 128, 128>}, {pipeline_mode = #tpu.pipeline_mode<synchronous>, transform_indices = @transform_2, window_bounds = array<i64: 128, 128>}, {pipeline_mode = #tpu.pipeline_mode<synchronous>, transform_indices = @transform_3, window_bounds = array<i64: 1, 128>}, {pipeline_mode = #tpu.pipeline_mode<synchronous>, transform_indices = @transform_4, window_bounds = array<i64: 144, 128>}]} {
    %c0 = arith.constant 0 : index
    %c0_0 = arith.constant 0 : index
    %0 = vector.load %arg1[%c0, %c0_0] : memref<144x128xbf16, #tpu.memory_space<vmem>>, vector<144x128xbf16>
    %c0_1 = arith.constant 0 : index
    %c0_2 = arith.constant 0 : index
    %1 = vector.load %arg2[%c0_1, %c0_2] : memref<128x128xbf16, #tpu.memory_space<vmem>>, vector<128x128xbf16>
    %cst = arith.constant dense<0.000000e+00> : vector<144x128xf32>
    %2 = tpu.matmul %0, %1, %cst {dimension_numbers = #tpu.dot_dimension_numbers<[1], [0], [0], [1], [0, 0, 1, 1], [], []>} : vector<144x128xbf16>, vector<128x128xbf16>, vector<144x128xf32> -> vector<144x128xf32>
    %c0_3 = arith.constant 0 : index
    %c0_4 = arith.constant 0 : index
    %3 = vector.load %arg4[%c0_3, %c0_4] : memref<1x128xf32, #tpu.memory_space<vmem>>, vector<1x128xf32>
    %4 = vector.broadcast %3 : vector<1x128xf32> to vector<144x128xf32>
    %5 = arith.addf %2, %4 : vector<144x128xf32>
    %c0_5 = arith.constant 0 : index
    %c0_6 = arith.constant 0 : index
    %6 = vector.load %arg6[%c0_5, %c0_6] : memref<144x128xf32, #tpu.memory_space<vmem>>, vector<144x128xf32>
    tpu.vector_store %arg6[%c0_5, %c0_6], %5 {strides = array<i32>} : memref<144x128xf32, #tpu.memory_space<vmem>>, vector<144x128xf32>,
    %cst_7 = arith.constant 0.000000e+00 : f32
    %7 = vector.broadcast %cst_7 : f32 to vector<16x128xf32>
    %c0_i32 = arith.constant 0 : i32
    %c16_i32 = arith.constant 16 : i32
    %8 = arith.muli %c0_i32, %c16_i32 : i32
    %9 = tpu.assume_multiple %8, 16 : i32
    %10 = arith.index_cast %9 : i32 to index
    %c0_8 = arith.constant 0 : index
    %11 = vector.load %arg6[%10, %c0_8] : memref<144x128xf32, #tpu.memory_space<vmem>>, vector<16x128xf32>
    %12 = arith.truncf %7 : vector<16x128xf32> to vector<16x128xbf16>
    %c0_9 = arith.constant 0 : index
    %c0_10 = arith.constant 0 : index
    %13 = vector.load %arg3[%c0_9, %c0_10] : memref<128x128xbf16, #tpu.memory_space<vmem>>, vector<128x128xbf16>
    %cst_11 = arith.constant dense<0.000000e+00> : vector<16x128xf32>
    %14 = tpu.matmul %12, %13, %cst_11 {dimension_numbers = #tpu.dot_dimension_numbers<[1], [0], [0], [1], [0, 0, 1, 1], [], []>} : vector<16x128xbf16>, vector<128x128xbf16>, vector<16x128xf32> -> vector<16x128xf32>
    %15 = arith.addf %11, %14 : vector<16x128xf32>
    %16 = math.tanh %15 : vector<16x128xf32>
    %cst_12 = arith.constant 5.000000e-01 : f32
    %17 = vector.broadcast %cst_12 : f32 to vector<16x128xf32>
    %18 = arith.mulf %17, %15 : vector<16x128xf32>
    %19 = math.tanh %18 : vector<16x128xf32>
    %cst_13 = arith.constant 1.000000e+00 : f32
    %20 = vector.broadcast %cst_13 : f32 to vector<16x128xf32>
    %21 = arith.addf %19, %20 : vector<16x128xf32>
    %cst_14 = arith.constant 5.000000e-01 : f32
    %22 = vector.broadcast %cst_14 : f32 to vector<16x128xf32>
    %23 = arith.mulf %22, %21 : vector<16x128xf32>
    %24 = arith.mulf %7, %23 : vector<16x128xf32>
    %25 = arith.mulf %16, %23 : vector<16x128xf32>
    %26 = arith.addf %24, %25 : vector<16x128xf32>
    %27 = math.tanh %26 : vector<16x128xf32>
    %28 = arith.mulf %27, %23 : vector<16x128xf32>
    %29 = arith.truncf %28 : vector<16x128xf32> to vector<16x128xbf16>
    %30 = arith.index_cast %9 : i32 to index
    %c0_15 = arith.constant 0 : index
    %31 = vector.load %arg5[%30, %c0_15] : memref<144x128xbf16, #tpu.memory_space<vmem>>, vector<16x128xbf16>
    tpu.vector_store %arg5[%30, %c0_15], %29 {strides = array<i32>} : memref<144x128xbf16, #tpu.memory_space<vmem>>, vector<16x128xbf16>,
    %c1_i32 = arith.constant 1 : i32
    %c16_i32_16 = arith.constant 16 : i32
    %32 = arith.muli %c1_i32, %c16_i32_16 : i32
    %33 = tpu.assume_multiple %32, 16 : i32
    %34 = arith.index_cast %33 : i32 to index
    %c0_17 = arith.constant 0 : index
    %35 = vector.load %arg6[%34, %c0_17] : memref<144x128xf32, #tpu.memory_space<vmem>>, vector<16x128xf32>
    %36 = arith.truncf %28 : vector<16x128xf32> to vector<16x128xbf16>
    %c0_18 = arith.constant 0 : index
    %c0_19 = arith.constant 0 : index
    %37 = vector.load %arg3[%c0_18, %c0_19] : memref<128x128xbf16, #tpu.memory_space<vmem>>, vector<128x128xbf16>
    %cst_20 = arith.constant dense<0.000000e+00> : vector<16x128xf32>
    %38 = tpu.matmul %36, %37, %cst_20 {dimension_numbers = #tpu.dot_dimension_numbers<[1], [0], [0], [1], [0, 0, 1, 1], [], []>} : vector<16x128xbf16>, vector<128x128xbf16>, vector<16x128xf32> -> vector<16x128xf32>
    %39 = arith.addf %35, %38 : vector<16x128xf32>
    %40 = math.tanh %39 : vector<16x128xf32>
    %cst_21 = arith.constant 5.000000e-01 : f32
    %41 = vector.broadcast %cst_21 : f32 to vector<16x128xf32>
    %42 = arith.mulf %41, %39 : vector<16x128xf32>
    %43 = math.tanh %42 : vector<16x128xf32>
    %cst_22 = arith.constant 1.000000e+00 : f32
    %44 = vector.broadcast %cst_22 : f32 to vector<16x128xf32>
    %45 = arith.addf %43, %44 : vector<16x128xf32>
    %cst_23 = arith.constant 5.000000e-01 : f32
    %46 = vector.broadcast %cst_23 : f32 to vector<16x128xf32>
    %47 = arith.mulf %46, %45 : vector<16x128xf32>
    %48 = arith.mulf %28, %47 : vector<16x128xf32>
    %49 = arith.mulf %40, %47 : vector<16x128xf32>
    %50 = arith.addf %48, %49 : vector<16x128xf32>
    %51 = math.tanh %50 : vector<16x128xf32>
    %52 = arith.mulf %51, %47 : vector<16x128xf32>
    %53 = arith.truncf %52 : vector<16x128xf32> to vector<16x128xbf16>
    %54 = arith.index_cast %33 : i32 to index
    %c0_24 = arith.constant 0 : index
    %55 = vector.load %arg5[%54, %c0_24] : memref<144x128xbf16, #tpu.memory_space<vmem>>, vector<16x128xbf16>
    tpu.vector_store %arg5[%54, %c0_24], %53 {strides = array<i32>} : memref<144x128xbf16, #tpu.memory_space<vmem>>, vector<16x128xbf16>,
    %c2_i32 = arith.constant 2 : i32
    %c16_i32_25 = arith.constant 16 : i32
    %56 = arith.muli %c2_i32, %c16_i32_25 : i32
    %57 = tpu.assume_multiple %56, 16 : i32
    %58 = arith.index_cast %57 : i32 to index
    %c0_26 = arith.constant 0 : index
    %59 = vector.load %arg6[%58, %c0_26] : memref<144x128xf32, #tpu.memory_space<vmem>>, vector<16x128xf32>
    %60 = arith.truncf %52 : vector<16x128xf32> to vector<16x128xbf16>
    %c0_27 = arith.constant 0 : index
    %c0_28 = arith.constant 0 : index
    %61 = vector.load %arg3[%c0_27, %c0_28] : memref<128x128xbf16, #tpu.memory_space<vmem>>, vector<128x128xbf16>
    %cst_29 = arith.constant dense<0.000000e+00> : vector<16x128xf32>
    %62 = tpu.matmul %60, %61, %cst_29 {dimension_numbers = #tpu.dot_dimension_numbers<[1], [0], [0], [1], [0, 0, 1, 1], [], []>} : vector<16x128xbf16>, vector<128x128xbf16>, vector<16x128xf32> -> vector<16x128xf32>
    %63 = arith.addf %59, %62 : vector<16x128xf32>
    %64 = math.tanh %63 : vector<16x128xf32>
    %cst_30 = arith.constant 5.000000e-01 : f32
    %65 = vector.broadcast %cst_30 : f32 to vector<16x128xf32>
    %66 = arith.mulf %65, %63 : vector<16x128xf32>
    %67 = math.tanh %66 : vector<16x128xf32>
    %cst_31 = arith.constant 1.000000e+00 : f32
    %68 = vector.broadcast %cst_31 : f32 to vector<16x128xf32>
    %69 = arith.addf %67, %68 : vector<16x128xf32>
    %cst_32 = arith.constant 5.000000e-01 : f32
    %70 = vector.broadcast %cst_32 : f32 to vector<16x128xf32>
    %71 = arith.mulf %70, %69 : vector<16x128xf32>
    %72 = arith.mulf %52, %71 : vector<16x128xf32>
    %73 = arith.mulf %64, %71 : vector<16x128xf32>
    %74 = arith.addf %72, %73 : vector<16x128xf32>
    %75 = math.tanh %74 : vector<16x128xf32>
    %76 = arith.mulf %75, %71 : vector<16x128xf32>
    %77 = arith.truncf %76 : vector<16x128xf32> to vector<16x128xbf16>
    %78 = arith.index_cast %57 : i32 to index
    %c0_33 = arith.constant 0 : index
    %79 = vector.load %arg5[%78, %c0_33] : memref<144x128xbf16, #tpu.memory_space<vmem>>, vector<16x128xbf16>
    tpu.vector_store %arg5[%78, %c0_33], %77 {strides = array<i32>} : memref<144x128xbf16, #tpu.memory_space<vmem>>, vector<16x128xbf16>,
    %c3_i32 = arith.constant 3 : i32
    %c16_i32_34 = arith.constant 16 : i32
    %80 = arith.muli %c3_i32, %c16_i32_34 : i32
    %81 = tpu.assume_multiple %80, 16 : i32
    %82 = arith.index_cast %81 : i32 to index
    %c0_35 = arith.constant 0 : index
    %83 = vector.load %arg6[%82, %c0_35] : memref<144x128xf32, #tpu.memory_space<vmem>>, vector<16x128xf32>
    %84 = arith.truncf %76 : vector<16x128xf32> to vector<16x128xbf16>
    %c0_36 = arith.constant 0 : index
    %c0_37 = arith.constant 0 : index
    %85 = vector.load %arg3[%c0_36, %c0_37] : memref<128x128xbf16, #tpu.memory_space<vmem>>, vector<128x128xbf16>
    %cst_38 = arith.constant dense<0.000000e+00> : vector<16x128xf32>
    %86 = tpu.matmul %84, %85, %cst_38 {dimension_numbers = #tpu.dot_dimension_numbers<[1], [0], [0], [1], [0, 0, 1, 1], [], []>} : vector<16x128xbf16>, vector<128x128xbf16>, vector<16x128xf32> -> vector<16x128xf32>
    %87 = arith.addf %83, %86 : vector<16x128xf32>
    %88 = math.tanh %87 : vector<16x128xf32>
    %cst_39 = arith.constant 5.000000e-01 : f32
    %89 = vector.broadcast %cst_39 : f32 to vector<16x128xf32>
    %90 = arith.mulf %89, %87 : vector<16x128xf32>
    %91 = math.tanh %90 : vector<16x128xf32>
    %cst_40 = arith.constant 1.000000e+00 : f32
    %92 = vector.broadcast %cst_40 : f32 to vector<16x128xf32>
    %93 = arith.addf %91, %92 : vector<16x128xf32>
    %cst_41 = arith.constant 5.000000e-01 : f32
    %94 = vector.broadcast %cst_41 : f32 to vector<16x128xf32>
    %95 = arith.mulf %94, %93 : vector<16x128xf32>
    %96 = arith.mulf %76, %95 : vector<16x128xf32>
    %97 = arith.mulf %88, %95 : vector<16x128xf32>
    %98 = arith.addf %96, %97 : vector<16x128xf32>
    %99 = math.tanh %98 : vector<16x128xf32>
    %100 = arith.mulf %99, %95 : vector<16x128xf32>
    %101 = arith.truncf %100 : vector<16x128xf32> to vector<16x128xbf16>
    %102 = arith.index_cast %81 : i32 to index
    %c0_42 = arith.constant 0 : index
    %103 = vector.load %arg5[%102, %c0_42] : memref<144x128xbf16, #tpu.memory_space<vmem>>, vector<16x128xbf16>
    tpu.vector_store %arg5[%102, %c0_42], %101 {strides = array<i32>} : memref<144x128xbf16, #tpu.memory_space<vmem>>, vector<16x128xbf16>,
    %c4_i32 = arith.constant 4 : i32
    %c16_i32_43 = arith.constant 16 : i32
    %104 = arith.muli %c4_i32, %c16_i32_43 : i32
    %105 = tpu.assume_multiple %104, 16 : i32
    %106 = arith.index_cast %105 : i32 to index
    %c0_44 = arith.constant 0 : index
    %107 = vector.load %arg6[%106, %c0_44] : memref<144x128xf32, #tpu.memory_space<vmem>>, vector<16x128xf32>
    %108 = arith.truncf %100 : vector<16x128xf32> to vector<16x128xbf16>
    %c0_45 = arith.constant 0 : index
    %c0_46 = arith.constant 0 : index
    %109 = vector.load %arg3[%c0_45, %c0_46] : memref<128x128xbf16, #tpu.memory_space<vmem>>, vector<128x128xbf16>
    %cst_47 = arith.constant dense<0.000000e+00> : vector<16x128xf32>
    %110 = tpu.matmul %108, %109, %cst_47 {dimension_numbers = #tpu.dot_dimension_numbers<[1], [0], [0], [1], [0, 0, 1, 1], [], []>} : vector<16x128xbf16>, vector<128x128xbf16>, vector<16x128xf32> -> vector<16x128xf32>
    %111 = arith.addf %107, %110 : vector<16x128xf32>
    %112 = math.tanh %111 : vector<16x128xf32>
    %cst_48 = arith.constant 5.000000e-01 : f32
    %113 = vector.broadcast %cst_48 : f32 to vector<16x128xf32>
    %114 = arith.mulf %113, %111 : vector<16x128xf32>
    %115 = math.tanh %114 : vector<16x128xf32>
    %cst_49 = arith.constant 1.000000e+00 : f32
    %116 = vector.broadcast %cst_49 : f32 to vector<16x128xf32>
    %117 = arith.addf %115, %116 : vector<16x128xf32>
    %cst_50 = arith.constant 5.000000e-01 : f32
    %118 = vector.broadcast %cst_50 : f32 to vector<16x128xf32>
    %119 = arith.mulf %118, %117 : vector<16x128xf32>
    %120 = arith.mulf %100, %119 : vector<16x128xf32>
    %121 = arith.mulf %112, %119 : vector<16x128xf32>
    %122 = arith.addf %120, %121 : vector<16x128xf32>
    %123 = math.tanh %122 : vector<16x128xf32>
    %124 = arith.mulf %123, %119 : vector<16x128xf32>
    %125 = arith.truncf %124 : vector<16x128xf32> to vector<16x128xbf16>
    %126 = arith.index_cast %105 : i32 to index
    %c0_51 = arith.constant 0 : index
    %127 = vector.load %arg5[%126, %c0_51] : memref<144x128xbf16, #tpu.memory_space<vmem>>, vector<16x128xbf16>
    tpu.vector_store %arg5[%126, %c0_51], %125 {strides = array<i32>} : memref<144x128xbf16, #tpu.memory_space<vmem>>, vector<16x128xbf16>,
    %c5_i32 = arith.constant 5 : i32
    %c16_i32_52 = arith.constant 16 : i32
    %128 = arith.muli %c5_i32, %c16_i32_52 : i32
    %129 = tpu.assume_multiple %128, 16 : i32
    %130 = arith.index_cast %129 : i32 to index
    %c0_53 = arith.constant 0 : index
    %131 = vector.load %arg6[%130, %c0_53] : memref<144x128xf32, #tpu.memory_space<vmem>>, vector<16x128xf32>
    %132 = arith.truncf %124 : vector<16x128xf32> to vector<16x128xbf16>
    %c0_54 = arith.constant 0 : index
    %c0_55 = arith.constant 0 : index
    %133 = vector.load %arg3[%c0_54, %c0_55] : memref<128x128xbf16, #tpu.memory_space<vmem>>, vector<128x128xbf16>
    %cst_56 = arith.constant dense<0.000000e+00> : vector<16x128xf32>
    %134 = tpu.matmul %132, %133, %cst_56 {dimension_numbers = #tpu.dot_dimension_numbers<[1], [0], [0], [1], [0, 0, 1, 1], [], []>} : vector<16x128xbf16>, vector<128x128xbf16>, vector<16x128xf32> -> vector<16x128xf32>
    %135 = arith.addf %131, %134 : vector<16x128xf32>
    %136 = math.tanh %135 : vector<16x128xf32>
    %cst_57 = arith.constant 5.000000e-01 : f32
    %137 = vector.broadcast %cst_57 : f32 to vector<16x128xf32>
    %138 = arith.mulf %137, %135 : vector<16x128xf32>
    %139 = math.tanh %138 : vector<16x128xf32>
    %cst_58 = arith.constant 1.000000e+00 : f32
    %140 = vector.broadcast %cst_58 : f32 to vector<16x128xf32>
    %141 = arith.addf %139, %140 : vector<16x128xf32>
    %cst_59 = arith.constant 5.000000e-01 : f32
    %142 = vector.broadcast %cst_59 : f32 to vector<16x128xf32>
    %143 = arith.mulf %142, %141 : vector<16x128xf32>
    %144 = arith.mulf %124, %143 : vector<16x128xf32>
    %145 = arith.mulf %136, %143 : vector<16x128xf32>
    %146 = arith.addf %144, %145 : vector<16x128xf32>
    %147 = math.tanh %146 : vector<16x128xf32>
    %148 = arith.mulf %147, %143 : vector<16x128xf32>
    %149 = arith.truncf %148 : vector<16x128xf32> to vector<16x128xbf16>
    %150 = arith.index_cast %129 : i32 to index
    %c0_60 = arith.constant 0 : index
    %151 = vector.load %arg5[%150, %c0_60] : memref<144x128xbf16, #tpu.memory_space<vmem>>, vector<16x128xbf16>
    tpu.vector_store %arg5[%150, %c0_60], %149 {strides = array<i32>} : memref<144x128xbf16, #tpu.memory_space<vmem>>, vector<16x128xbf16>,
    %c6_i32 = arith.constant 6 : i32
    %c16_i32_61 = arith.constant 16 : i32
    %152 = arith.muli %c6_i32, %c16_i32_61 : i32
    %153 = tpu.assume_multiple %152, 16 : i32
    %154 = arith.index_cast %153 : i32 to index
    %c0_62 = arith.constant 0 : index
    %155 = vector.load %arg6[%154, %c0_62] : memref<144x128xf32, #tpu.memory_space<vmem>>, vector<16x128xf32>
    %156 = arith.truncf %148 : vector<16x128xf32> to vector<16x128xbf16>
    %c0_63 = arith.constant 0 : index
    %c0_64 = arith.constant 0 : index
    %157 = vector.load %arg3[%c0_63, %c0_64] : memref<128x128xbf16, #tpu.memory_space<vmem>>, vector<128x128xbf16>
    %cst_65 = arith.constant dense<0.000000e+00> : vector<16x128xf32>
    %158 = tpu.matmul %156, %157, %cst_65 {dimension_numbers = #tpu.dot_dimension_numbers<[1], [0], [0], [1], [0, 0, 1, 1], [], []>} : vector<16x128xbf16>, vector<128x128xbf16>, vector<16x128xf32> -> vector<16x128xf32>
    %159 = arith.addf %155, %158 : vector<16x128xf32>
    %160 = math.tanh %159 : vector<16x128xf32>
    %cst_66 = arith.constant 5.000000e-01 : f32
    %161 = vector.broadcast %cst_66 : f32 to vector<16x128xf32>
    %162 = arith.mulf %161, %159 : vector<16x128xf32>
    %163 = math.tanh %162 : vector<16x128xf32>
    %cst_67 = arith.constant 1.000000e+00 : f32
    %164 = vector.broadcast %cst_67 : f32 to vector<16x128xf32>
    %165 = arith.addf %163, %164 : vector<16x128xf32>
    %cst_68 = arith.constant 5.000000e-01 : f32
    %166 = vector.broadcast %cst_68 : f32 to vector<16x128xf32>
    %167 = arith.mulf %166, %165 : vector<16x128xf32>
    %168 = arith.mulf %148, %167 : vector<16x128xf32>
    %169 = arith.mulf %160, %167 : vector<16x128xf32>
    %170 = arith.addf %168, %169 : vector<16x128xf32>
    %171 = math.tanh %170 : vector<16x128xf32>
    %172 = arith.mulf %171, %167 : vector<16x128xf32>
    %173 = arith.truncf %172 : vector<16x128xf32> to vector<16x128xbf16>
    %174 = arith.index_cast %153 : i32 to index
    %c0_69 = arith.constant 0 : index
    %175 = vector.load %arg5[%174, %c0_69] : memref<144x128xbf16, #tpu.memory_space<vmem>>, vector<16x128xbf16>
    tpu.vector_store %arg5[%174, %c0_69], %173 {strides = array<i32>} : memref<144x128xbf16, #tpu.memory_space<vmem>>, vector<16x128xbf16>,
    %c7_i32 = arith.constant 7 : i32
    %c16_i32_70 = arith.constant 16 : i32
    %176 = arith.muli %c7_i32, %c16_i32_70 : i32
    %177 = tpu.assume_multiple %176, 16 : i32
    %178 = arith.index_cast %177 : i32 to index
    %c0_71 = arith.constant 0 : index
    %179 = vector.load %arg6[%178, %c0_71] : memref<144x128xf32, #tpu.memory_space<vmem>>, vector<16x128xf32>
    %180 = arith.truncf %172 : vector<16x128xf32> to vector<16x128xbf16>
    %c0_72 = arith.constant 0 : index
    %c0_73 = arith.constant 0 : index
    %181 = vector.load %arg3[%c0_72, %c0_73] : memref<128x128xbf16, #tpu.memory_space<vmem>>, vector<128x128xbf16>
    %cst_74 = arith.constant dense<0.000000e+00> : vector<16x128xf32>
    %182 = tpu.matmul %180, %181, %cst_74 {dimension_numbers = #tpu.dot_dimension_numbers<[1], [0], [0], [1], [0, 0, 1, 1], [], []>} : vector<16x128xbf16>, vector<128x128xbf16>, vector<16x128xf32> -> vector<16x128xf32>
    %183 = arith.addf %179, %182 : vector<16x128xf32>
    %184 = math.tanh %183 : vector<16x128xf32>
    %cst_75 = arith.constant 5.000000e-01 : f32
    %185 = vector.broadcast %cst_75 : f32 to vector<16x128xf32>
    %186 = arith.mulf %185, %183 : vector<16x128xf32>
    %187 = math.tanh %186 : vector<16x128xf32>
    %cst_76 = arith.constant 1.000000e+00 : f32
    %188 = vector.broadcast %cst_76 : f32 to vector<16x128xf32>
    %189 = arith.addf %187, %188 : vector<16x128xf32>
    %cst_77 = arith.constant 5.000000e-01 : f32
    %190 = vector.broadcast %cst_77 : f32 to vector<16x128xf32>
    %191 = arith.mulf %190, %189 : vector<16x128xf32>
    %192 = arith.mulf %172, %191 : vector<16x128xf32>
    %193 = arith.mulf %184, %191 : vector<16x128xf32>
    %194 = arith.addf %192, %193 : vector<16x128xf32>
    %195 = math.tanh %194 : vector<16x128xf32>
    %196 = arith.mulf %195, %191 : vector<16x128xf32>
    %197 = arith.truncf %196 : vector<16x128xf32> to vector<16x128xbf16>
    %198 = arith.index_cast %177 : i32 to index
    %c0_78 = arith.constant 0 : index
    %199 = vector.load %arg5[%198, %c0_78] : memref<144x128xbf16, #tpu.memory_space<vmem>>, vector<16x128xbf16>
    tpu.vector_store %arg5[%198, %c0_78], %197 {strides = array<i32>} : memref<144x128xbf16, #tpu.memory_space<vmem>>, vector<16x128xbf16>,
    %c8_i32 = arith.constant 8 : i32
    %c16_i32_79 = arith.constant 16 : i32
    %200 = arith.muli %c8_i32, %c16_i32_79 : i32
    %201 = tpu.assume_multiple %200, 16 : i32
    %202 = arith.index_cast %201 : i32 to index
    %c0_80 = arith.constant 0 : index
    %203 = vector.load %arg6[%202, %c0_80] : memref<144x128xf32, #tpu.memory_space<vmem>>, vector<16x128xf32>
    %204 = arith.truncf %196 : vector<16x128xf32> to vector<16x128xbf16>
    %c0_81 = arith.constant 0 : index
    %c0_82 = arith.constant 0 : index
    %205 = vector.load %arg3[%c0_81, %c0_82] : memref<128x128xbf16, #tpu.memory_space<vmem>>, vector<128x128xbf16>
    %cst_83 = arith.constant dense<0.000000e+00> : vector<16x128xf32>
    %206 = tpu.matmul %204, %205, %cst_83 {dimension_numbers = #tpu.dot_dimension_numbers<[1], [0], [0], [1], [0, 0, 1, 1], [], []>} : vector<16x128xbf16>, vector<128x128xbf16>, vector<16x128xf32> -> vector<16x128xf32>
    %207 = arith.addf %203, %206 : vector<16x128xf32>
    %208 = math.tanh %207 : vector<16x128xf32>
    %cst_84 = arith.constant 5.000000e-01 : f32
    %209 = vector.broadcast %cst_84 : f32 to vector<16x128xf32>
    %210 = arith.mulf %209, %207 : vector<16x128xf32>
    %211 = math.tanh %210 : vector<16x128xf32>
    %cst_85 = arith.constant 1.000000e+00 : f32
    %212 = vector.broadcast %cst_85 : f32 to vector<16x128xf32>
    %213 = arith.addf %211, %212 : vector<16x128xf32>
    %cst_86 = arith.constant 5.000000e-01 : f32
    %214 = vector.broadcast %cst_86 : f32 to vector<16x128xf32>
    %215 = arith.mulf %214, %213 : vector<16x128xf32>
    %216 = arith.mulf %196, %215 : vector<16x128xf32>
    %217 = arith.mulf %208, %215 : vector<16x128xf32>
    %218 = arith.addf %216, %217 : vector<16x128xf32>
    %219 = math.tanh %218 : vector<16x128xf32>
    %220 = arith.mulf %219, %215 : vector<16x128xf32>
    %221 = arith.truncf %220 : vector<16x128xf32> to vector<16x128xbf16>
    %222 = arith.index_cast %201 : i32 to index
    %c0_87 = arith.constant 0 : index
    %223 = vector.load %arg5[%222, %c0_87] : memref<144x128xbf16, #tpu.memory_space<vmem>>, vector<16x128xbf16>
    tpu.vector_store %arg5[%222, %c0_87], %221 {strides = array<i32>} : memref<144x128xbf16, #tpu.memory_space<vmem>>, vector<16x128xbf16>,
    %c9_i32 = arith.constant 9 : i32
    return
  }
  func.func @transform_0(%arg0: i32) -> (i32, i32) {
    %c0_i32 = arith.constant 0 : i32
    %c0_i32_0 = arith.constant 0 : i32
    %c0_i32_1 = arith.constant 0 : i32
    return %c0_i32, %c0_i32_0 : i32, i32
  }
  func.func @transform_1(%arg0: i32) -> (i32, i32) {
    %c0_i32 = arith.constant 0 : i32
    %c0_i32_0 = arith.constant 0 : i32
    %c0_i32_1 = arith.constant 0 : i32
    return %c0_i32, %c0_i32_0 : i32, i32
  }
  func.func @transform_2(%arg0: i32) -> (i32, i32) {
    %c0_i32 = arith.constant 0 : i32
    %c0_i32_0 = arith.constant 0 : i32
    %c0_i32_1 = arith.constant 0 : i32
    return %c0_i32, %c0_i32_0 : i32, i32
  }
  func.func @transform_3(%arg0: i32) -> (i32, i32) {
    %c0_i32 = arith.constant 0 : i32
    %c0_i32_0 = arith.constant 0 : i32
    %c0_i32_1 = arith.constant 0 : i32
    return %c0_i32, %c0_i32_0 : i32, i32
  }
  func.func @transform_4(%arg0: i32) -> (i32, i32) {
    %c0_i32 = arith.constant 0 : i32
    %c0_i32_0 = arith.constant 0 : i32
    %c0_i32_1 = arith.constant 0 : i32
    return %c0_i32, %c0_i32_0 : i32, i32
  }
}

</mosaic_0001>

<bundles_post_ra>
// kernel: tpu_custom_call.1
= control target key start
LH: loop header
LB: loop body
LE: loop exit
PB: predicated region body
PF: predicated region fallthrough
CT: control target
= control target key end

     0   :  { %9 = vsyncpa [#allocation4], 0  ;;  %s2137_s0 = inlined_call_operand.hbm [shape: bf16[144,128], index: 0, kind: input, shape index: {}]   ;;  %s2138_s1 = inlined_call_operand.hbm [shape: bf16[128,128], index: 1, kind: input, shape index: {}]   ;;  %s2139_s2 = inlined_call_operand.hbm [shape: bf16[128,128], index: 2, kind: input, shape index: {}]   ;;  %s2140_s3 = inlined_call_operand.vmem [shape: f32[1,128], index: 3, kind: input, shape index: {}]   ;;  %s2141_s4 = inlined_call_operand.hbm [shape: bf16[144,128], index: 4, kind: output, shape index: {}]  }
   0x1   :  { %10 = vsyncpa [#allocation7], 0 }
   0x2   :  { %11 = vsyncpa [#allocation5], 0  ;;  %s29_s17 = sshll.u32 %s2138_s1, 4  ;;  %s2040_s18 = smov [#allocation6]   ;;  %s30_s17 = int_to_ptr.hbm [resolvable:$true] %s29_s17 }
   0x3   :  { %s31_s19 = sshll.u32 %s2040_s18, 4  ;;  %s16_s22 = sshll.u32 %s2137_s0, 4  ;;  %s32_s19 = int_to_ptr.vmem [resolvable:$true] %s31_s19  ;;  %s17_s22 = int_to_ptr.hbm [resolvable:$true] %s16_s22 }
   0x4   :  { %s2041_s23 = smov 64   ;;  %s2042_s24 = smov 4  }
   0x5   :  { %37 = dma.hbm_to_vmem [thread:$0]  %s30_s17, 1024, %s32_s19, [#allocation7], %s2041_s23, %s2041_s23, %s2042_s24  }
   0x6   :  { %s2043_s25 = smov [#allocation3]   ;;  %s42_s1 = sshll.u32 %s2139_s2, 4  ;;  %s43_s1 = int_to_ptr.hbm [resolvable:$true] %s42_s1 }
   0x7   :  { %s18_s26 = sshll.u32 %s2043_s25, 4  ;;  %s2044_s0 = smov [#allocation8]   ;;  %s19_s26 = int_to_ptr.vmem [resolvable:$true] %s18_s26 }
   0x8   :  { %24 = dma.hbm_to_vmem [thread:$0]  %s17_s22, 1152, %s19_s26, [#allocation4], %s2041_s23, %s2041_s23, %s2042_s24  }
   0x9   :  { %s44_s29 = sshll.u32 %s2044_s0, 4  ;;  %s45_s29 = int_to_ptr.vmem [resolvable:$true] %s44_s29 }
   0xa   :  { %50 = dma.hbm_to_vmem [thread:$0]  %s43_s1, 1024, %s45_s29, [#allocation7], %s2041_s23, %s2041_s23, %s2042_s24  }
   0xb   :  { %2034 = dma.done.wait [#allocation4], 1152  }
   0xc   :  { %2035 = vsyncadd [#allocation4], 4294966144 }
   0xd   :  { %2036 = dma.done.wait [#allocation7], 2048  }
   0xe   :  { %2037 = vsyncadd [#allocation7], 4294965248  ;;  %v1688_v0 = vld [vmem:[#allocation6 + $0x38] sm:$0xff]  ;;  %v1687_v1 = vld [vmem:[#allocation6 + $0x30] sm:$0xff]  ;;  %v2045_v19 = vmov 0   ;;  %s1302_s8 = sshll.u32 %s2141_s4, 4  ;;  %s1303_s8 = int_to_ptr.hbm [resolvable:$true] %s1302_s8 }
   0xf   :  { %1806 = vmatpush.bf16.msra.mxu1 %v1688_v0  ;;  %206 = vmatpush.bf16.msra.mxu0 %v1688_v0  ;;  %v1686_v2 = vld [vmem:[#allocation6 + $0x28] sm:$0xff]  ;;  %v1685_v3 = vld [vmem:[#allocation6 + $0x20] sm:$0xff]  ;;  %v1684_v4 = vld [vmem:[#allocation6 + $0x18] sm:$0xff] }
  0x10   :  { %1807 = vmatpush.bf16.msra.mxu2 %v1688_v0  ;;  %v1683_v5 = vld [vmem:[#allocation6 + $0x10] sm:$0xff]  ;;  %v1682_v6 = vld [vmem:[#allocation6 + $0x8] sm:$0xff]  ;;  %v1681_v7 = vld [vmem:[#allocation6] sm:$0xff] }
  0x11   :  { %v1696_v8 = vld [vmem:[#allocation8 + $0x38] sm:$0xff]  ;;  %v1678_v9 = vld [vmem:[#allocation3 + $0x30] sm:$0xff]  ;;  %v1695_v11 = vld [vmem:[#allocation8 + $0x30] sm:$0xff] }
  0x12   :  { %v1672_v10 = vld [vmem:[#allocation3] sm:$0xff]  ;;  %v1694_v12 = vld [vmem:[#allocation8 + $0x28] sm:$0xff]  ;;  %v1693_v13 = vld [vmem:[#allocation8 + $0x20] sm:$0xff] }
  0x13   :  { %1808 = vmatpush.bf16.msra.mxu1 %v1687_v1  ;;  %207 = vmatpush.bf16.msra.mxu0 %v1687_v1  ;;  %v1692_v14 = vld [vmem:[#allocation8 + $0x18] sm:$0xff]  ;;  %v1679_v15 = vld [vmem:[#allocation3 + $0x38] sm:$0xff]  ;;  %v1690_v17 = vld [vmem:[#allocation8 + $0x8] sm:$0xff] }
  0x14   :  { %1809 = vmatpush.bf16.msra.mxu2 %v1687_v1  ;;  %v1691_v16 = vld [vmem:[#allocation8 + $0x10] sm:$0xff]  ;;  %v1689_v18 = vld [vmem:[#allocation8] sm:$0xff]  ;;  %v1704_v22 = vld [vmem:[#allocation8 + $0x38] sm:$0xff] }
  0x15   :  { %v1703_v23 = vld [vmem:[#allocation8 + $0x30] sm:$0xff]  ;;  %v1680_v25 = vld [vmem:[#allocation3 + $0x40] sm:$0xff]  ;;  %v1702_v26 = vld [vmem:[#allocation8 + $0x28] sm:$0xff] }
  0x16   :  { %v1701_v27 = vld [vmem:[#allocation8 + $0x20] sm:$0xff]  ;;  %v1700_v30 = vld [vmem:[#allocation8 + $0x18] sm:$0xff]  ;;  %v1699_v33 = vld [vmem:[#allocation8 + $0x10] sm:$0xff] }
  0x17   :  { %1810 = vmatpush.bf16.msra.mxu1 %v1686_v2  ;;  %208 = vmatpush.bf16.msra.mxu0 %v1686_v2  ;;  %v2101_v31 = vld [vmem:[%s2140_s3] ss:$0 sm:$0xff]  ;;  %v1698_v36 = vld [vmem:[#allocation8 + $0x8] sm:$0xff]  ;;  %v1673_v39 = vld [vmem:[#allocation3 + $0x8] sm:$0xff]  ;;  %s2046_s3 = smov [#allocation9]  }
  0x18   :  { %1811 = vmatpush.bf16.msra.mxu2 %v1686_v2  ;;  %v1697_v40 = vld [vmem:[#allocation8] sm:$0xff]  ;;  %s1300_s5 = sshll.u32 %s2046_s3, 4  ;;  %s1301_s5 = int_to_ptr.vmem [resolvable:$true] %s1300_s5 }
  0x1b   :  { %1812 = vmatpush.bf16.msra.mxu1 %v1685_v3  ;;  %209 = vmatpush.bf16.msra.mxu0 %v1685_v3 }
  0x1c   :  { %1813 = vmatpush.bf16.msra.mxu2 %v1685_v3 }
  0x1f   :  { %1814 = vmatpush.bf16.msra.mxu1 %v1684_v4  ;;  %210 = vmatpush.bf16.msra.mxu0 %v1684_v4 }
  0x20   :  { %1815 = vmatpush.bf16.msra.mxu2 %v1684_v4 }
  0x23   :  { %1816 = vmatpush.bf16.msra.mxu1 %v1683_v5  ;;  %211 = vmatpush.bf16.msra.mxu0 %v1683_v5 }
  0x24   :  { %1817 = vmatpush.bf16.msra.mxu2 %v1683_v5  ;;  %v1712_v5 = vld [vmem:[#allocation8 + $0x38] sm:$0xff] }
  0x25   :  { %571 = vmatpush.bf16.msra.mxu3 %v1712_v5  ;;  %v1713_v5 = vld [vmem:[#allocation8] sm:$0xff] }
  0x27   :  { %1818 = vmatpush.bf16.msra.mxu1 %v1682_v6  ;;  %212 = vmatpush.bf16.msra.mxu0 %v1682_v6 }
  0x28   :  { %1819 = vmatpush.bf16.msra.mxu2 %v1682_v6 }
  0x2b   :  { %1820 = vmatpush.bf16.msra.mxu1 %v1681_v7  ;;  %213 = vmatpush.bf16.msra.mxu0 %v1681_v7 }
  0x2c   :  { %1821 = vmatpush.bf16.msra.mxu2 %v1681_v7  ;;  %v1711_v7 = vld [vmem:[#allocation8 + $0x30] sm:$0xff] }
  0x2d   :  { %572 = vmatpush.bf16.msra.mxu3 %v1711_v7 }
  0x2e   :  { %244 = vmatmul.bf16.vlgmr.msra.gmra.mxu1 %v1678_v9  ;;  %214 = vmatmul.bf16.vlgmr.msra.gmra.mxu0 %v1672_v10  ;;  %v1709_v9 = vld [vmem:[#allocation8 + $0x20] sm:$0xff] }
  0x2f   :  { %344 = vmatpush.bf16.msrb.mxu1 %v1696_v8  ;;  %254 = vmatmul.bf16.vlgmr.msra.gmra.mxu2 %v1680_v25  ;;  %v1710_v8 = vld [vmem:[#allocation8 + $0x28] sm:$0xff] }
  0x30   :  { %457 = vmatpush.bf16.msrb.mxu2 %v1704_v22 }
  0x31   :  { %573 = vmatpush.bf16.msra.mxu3 %v1710_v8 }
  0x33   :  { %345 = vmatpush.bf16.msrb.mxu1 %v1695_v11 }
  0x34   :  { %458 = vmatpush.bf16.msrb.mxu2 %v1703_v23  ;;  %v1705_v23 = vld [vmem:[#allocation8] sm:$0xff] }
  0x35   :  { %574 = vmatpush.bf16.msra.mxu3 %v1709_v9 }
  0x37   :  { %346 = vmatpush.bf16.msrb.mxu1 %v1694_v12  ;;  %v1708_v12 = vld [vmem:[#allocation8 + $0x18] sm:$0xff] }
  0x38   :  { %459 = vmatpush.bf16.msrb.mxu2 %v1702_v26 }
  0x39   :  { %575 = vmatpush.bf16.msra.mxu3 %v1708_v12 }
  0x3b   :  { %347 = vmatpush.bf16.msrb.mxu1 %v1693_v13  ;;  %v1707_v13 = vld [vmem:[#allocation8 + $0x10] sm:$0xff] }
  0x3c   :  { %460 = vmatpush.bf16.msrb.mxu2 %v1701_v27 }
  0x3d   :  { %576 = vmatpush.bf16.msra.mxu3 %v1707_v13 }
  0x3e   :  { %249 = vmatmul.bf16.gmra.mxu1 %v1679_v15  ;;  %219 = vmatmul.bf16.gmra.mxu0 %v1673_v39 }
  0x3f   :  { %348 = vmatpush.bf16.msrb.mxu1 %v1692_v14  ;;  %v1674_v14 = vld [vmem:[#allocation3 + $0x10] sm:$0xff] }
  0x40   :  { %461 = vmatpush.bf16.msrb.mxu2 %v1700_v30 }
  0x43   :  { %349 = vmatpush.bf16.msrb.mxu1 %v1691_v16 }
  0x44   :  { %462 = vmatpush.bf16.msrb.mxu2 %v1699_v33 }
  0x47   :  { %350 = vmatpush.bf16.msrb.mxu1 %v1690_v17  ;;  %v1706_v17 = vld [vmem:[#allocation8 + $0x8] sm:$0xff] }
  0x48   :  { %463 = vmatpush.bf16.msrb.mxu2 %v1698_v36  ;;  %577 = vmatpush.bf16.msra.mxu3 %v1706_v17 }
  0x4b   :  { %351 = vmatpush.bf16.msrb.mxu1 %v1689_v18 }
  0x4c   :  { %464 = vmatpush.bf16.msrb.mxu2 %v1697_v40  ;;  %578 = vmatpush.bf16.msra.mxu3 %v1705_v23 }
  0x4e   :  { %352 = vmatmul.bf16.vlgmr.msrb.gmra.mxu1 %v2045_v19  ;;  %224 = vmatmul.bf16.gmra.mxu0 %v1674_v14 }
  0xab   :  { %v2090_v20 = vpop.f32.mrf.mxu1  ;;  %v215_v29 = vpop.f32.mrf.mxu0 }
  0xac   :  { %v216_v32 = vadd.f32 %v2101_v31, %v215_v29 }
  0xb2   :  { %v2105_v6 = vpop.f32.mrf.mxu2 }
  0xb3   :  { %v2092_v21 = vpop.f32.mrf.mxu1  ;;  %v217_v38 = vpop.f32.mrf.mxu0 }
  0xb4   :  { %v218_v41 = vadd.f32 %v2101_v31, %v217_v38 }
  0xba   :  { %v2107_v10 = vpop.f32.mrf.mxu2 }
  0xbb   :  { %v2094_v24 = vpop.f32.mrf.mxu1  ;;  %v220_v11 = vpop.f32.mrf.mxu0 }
  0xbc   :  { %v221_v15 = vadd.f32 %v2101_v31, %v220_v11 }
  0xc3   :  { %v2096_v28 = vpop.f32.mrf.mxu1  ;;  %v222_v22 = vpop.f32.mrf.mxu0 }
  0xc4   :  { %v223_v25 = vadd.f32 %v2101_v31, %v222_v22 }
  0xcb   :  { %v353_v34 = vpop.f32.mrf.mxu1 }
  0xcc   :  { %v358_v35 = vadd.f32 %v353_v34, %v216_v32 }
  0xce   :  { %v362_v37 = vmul.f32 0.5, %v358_v35 }
  0xd0   :  { %1830 = vtanh.f32 %v362_v37 }
  0xd1   :  { %1832 = vtanh.f32 %v358_v35 }
  0xd3   :  { %v355_v42 = vpop.f32.mrf.mxu1 }
  0xd4   :  { %v359_v43 = vadd.f32 %v355_v42, %v218_v41 }
  0xd6   :  { %v1831_v44 = vpop.eup %1830  ;;  %v363_v45 = vmul.f32 0.5, %v359_v43 }
  0xd7   :  { %v366_v46 = vadd.f32 1.0, %v1831_v44  ;;  %v1833_v48 = vpop.eup %1832 }
  0xd8   :  { %1834 = vtanh.f32 %v363_v45 }
  0xd9   :  { %v368_v47 = vmul.f32 0.5, %v366_v46  ;;  %1836 = vtanh.f32 %v359_v43 }
  0xdb   :  { %v370_v49 = vmul.f32 0.0, %v368_v47  ;;  %v372_v50 = vmul.f32 %v1833_v48, %v368_v47 }
  0xdd   :  { %v374_v51 = vadd.f32 %v372_v50, %v370_v49 }
  0xde   :  { %v1835_v52 = vpop.eup %1834 }
  0xdf   :  { %v367_v53 = vadd.f32 1.0, %v1835_v52  ;;  %1838 = vtanh.f32 %v374_v51  ;;  %v1837_v55 = vpop.eup %1836 }
  0xe1   :  { %v369_v54 = vmul.f32 0.5, %v367_v53 }
  0xe3   :  { %v371_v56 = vmul.f32 0.0, %v369_v54  ;;  %v373_v57 = vmul.f32 %v1837_v55, %v369_v54  ;;  %v1720_v55 = vld [vmem:[#allocation8 + $0x38] sm:$0xff] }
  0xe4   :  { %685 = vmatpush.bf16.msra.mxu1 %v1720_v55  ;;  %v1721_v55 = vld [vmem:[#allocation8] sm:$0xff] }
  0xe5   :  { %v375_v58 = vadd.f32 %v373_v57, %v371_v56  ;;  %v1839_v59 = vpop.eup %1838  ;;  %v1719_v56 = vld [vmem:[#allocation8 + $0x30] sm:$0xff]  ;;  %v1718_v57 = vld [vmem:[#allocation8 + $0x28] sm:$0xff] }
  0xe6   :  { %v378_v60 = vmul.f32 %v1839_v59, %v368_v47  ;;  %v225_v59 = vpop.f32.mrf.mxu0 }
  0xe7   :  { %1840 = vtanh.f32 %v375_v58  ;;  %v1717_v58 = vld [vmem:[#allocation8 + $0x20] sm:$0xff] }
  0xe8   :  { %v380_v63 = vpack.c.bf16 %v378_v60, %v378_v60  ;;  %686 = vmatpush.bf16.msra.mxu1 %v1719_v56 }
  0xea   :  { %v405_v2 = vunpack.c.l.b16 %v380_v63  ;;  %v1675_v63 = vld [vmem:[#allocation3 + $0x18] sm:$0xff] }
  0xeb   :  { %229 = vmatmul.bf16.gmra.mxu0 %v1675_v63 }
  0xec   :  { %687 = vmatpush.bf16.msra.mxu1 %v1718_v57 }
  0xed   :  { %v1841_v61 = vpop.eup %1840 }
  0xee   :  { %v379_v62 = vmul.f32 %v1841_v61, %v369_v54  ;;  %v226_v61 = vadd.f32 %v2101_v31, %v225_v59 }
  0xf0   :  { %v1764_v0 = vpack.c.bf16 %v379_v62, %v378_v60  ;;  %v381_v1 = vpack.c.bf16 %v379_v62, %v379_v62  ;;  %688 = vmatpush.bf16.msra.mxu1 %v1717_v58 }
  0xf2   :  { %1765 = vst [vmem:[#allocation9] sm:$0xff] %v1764_v0   ;;  %v406_v3 = vunpack.c.l.b16 %v381_v1 }
  0xf4   :  { %v407_v4 = vpack.c.b16 %v406_v3, %v405_v2  ;;  %v1714_v2 = vld [vmem:[#allocation8 + $0x8] sm:$0xff] }
  0xf6   :  { %465 = vmatmul.bf16.vlgmr.msrb.gmra.mxu2 %v407_v4  ;;  %v227_v4 = vpop.f32.mrf.mxu0 }
  0xf7   :  { %v228_v7 = vadd.f32 %v2101_v31, %v227_v4 }
 0x179   :  { %v466_v16 = vpop.f32.mrf.mxu2 }
 0x17a   :  { %v471_v18 = vadd.f32 %v466_v16, %v221_v15 }
 0x17c   :  { %v475_v19 = vmul.f32 0.5, %v471_v18 }
 0x17e   :  { %1842 = vtanh.f32 %v475_v19 }
 0x17f   :  { %1844 = vtanh.f32 %v471_v18 }
 0x181   :  { %v468_v26 = vpop.f32.mrf.mxu2 }
 0x182   :  { %v472_v27 = vadd.f32 %v468_v26, %v223_v25 }
 0x184   :  { %v1843_v29 = vpop.eup %1842  ;;  %v476_v30 = vmul.f32 0.5, %v472_v27 }
 0x185   :  { %v479_v32 = vadd.f32 1.0, %v1843_v29  ;;  %v1845_v34 = vpop.eup %1844 }
 0x186   :  { %1846 = vtanh.f32 %v476_v30 }
 0x187   :  { %v481_v33 = vmul.f32 0.5, %v479_v32  ;;  %1848 = vtanh.f32 %v472_v27 }
 0x189   :  { %v483_v35 = vmul.f32 %v481_v33, %v378_v60  ;;  %v485_v36 = vmul.f32 %v1845_v34, %v481_v33  ;;  %v1716_v60 = vld [vmem:[#allocation8 + $0x18] sm:$0xff] }
 0x18a   :  { %689 = vmatpush.bf16.msra.mxu1 %v1716_v60 }
 0x18b   :  { %v487_v37 = vadd.f32 %v485_v36, %v483_v35 }
 0x18c   :  { %v1847_v38 = vpop.eup %1846 }
 0x18d   :  { %v480_v39 = vadd.f32 1.0, %v1847_v38  ;;  %1850 = vtanh.f32 %v487_v37  ;;  %v1849_v41 = vpop.eup %1848 }
 0x18f   :  { %v482_v40 = vmul.f32 0.5, %v480_v39 }
 0x191   :  { %v484_v42 = vmul.f32 %v482_v40, %v379_v62  ;;  %v486_v43 = vmul.f32 %v1849_v41, %v482_v40  ;;  %v1715_v62 = vld [vmem:[#allocation8 + $0x10] sm:$0xff]  ;;  %v1728_v41 = vld [vmem:[#allocation8 + $0x38] sm:$0xff] }
 0x192   :  { %690 = vmatpush.bf16.msra.mxu1 %v1715_v62  ;;  %799 = vmatpush.bf16.msra.mxu2 %v1728_v41  ;;  %v1729_v41 = vld [vmem:[#allocation8] sm:$0xff] }
 0x193   :  { %v488_v44 = vadd.f32 %v486_v43, %v484_v42  ;;  %v1851_v45 = vpop.eup %1850  ;;  %v1727_v42 = vld [vmem:[#allocation8 + $0x30] sm:$0xff]  ;;  %v1726_v43 = vld [vmem:[#allocation8 + $0x28] sm:$0xff] }
 0x194   :  { %v491_v46 = vmul.f32 %v1851_v45, %v481_v33  ;;  %v230_v45 = vpop.f32.mrf.mxu0 }
 0x195   :  { %1852 = vtanh.f32 %v488_v44  ;;  %v1725_v44 = vld [vmem:[#allocation8 + $0x20] sm:$0xff] }
 0x196   :  { %v493_v49 = vpack.c.bf16 %v491_v46, %v491_v46  ;;  %691 = vmatpush.bf16.msra.mxu1 %v1714_v2  ;;  %800 = vmatpush.bf16.msra.mxu2 %v1727_v42 }
 0x198   :  { %v519_v52 = vunpack.c.l.b16 %v493_v49 }
 0x19a   :  { %692 = vmatpush.bf16.msra.mxu1 %v1713_v5  ;;  %801 = vmatpush.bf16.msra.mxu2 %v1726_v43 }
 0x19b   :  { %v1853_v47 = vpop.eup %1852 }
 0x19c   :  { %v492_v48 = vmul.f32 %v1853_v47, %v482_v40  ;;  %v231_v47 = vadd.f32 %v2101_v31, %v230_v45 }
 0x19e   :  { %v494_v50 = vpack.c.bf16 %v492_v48, %v492_v48  ;;  %v1769_v51 = vpack.c.bf16 %v492_v48, %v491_v46  ;;  %802 = vmatpush.bf16.msra.mxu2 %v1725_v44 }
 0x1a0   :  { %1770 = vst [vmem:[#allocation9 + $0x8] sm:$0xff] %v1769_v51   ;;  %v520_v53 = vunpack.c.l.b16 %v494_v50  ;;  %v1722_v51 = vld [vmem:[#allocation8 + $0x8] sm:$0xff] }
 0x1a2   :  { %v521_v54 = vpack.c.b16 %v520_v53, %v519_v52  ;;  %v232_v53 = vpop.f32.mrf.mxu0 }
 0x1a3   :  { %v233_v56 = vadd.f32 %v2101_v31, %v232_v53 }
 0x1a4   :  { %579 = vmatmul.bf16.vlgmr.msra.gmra.mxu3 %v521_v54  ;;  %v1676_v54 = vld [vmem:[#allocation3 + $0x20] sm:$0xff] }
 0x1a5   :  { %234 = vmatmul.bf16.gmra.mxu0 %v1676_v54 }
 0x227   :  { %v580_v0 = vpop.f32.mrf.mxu3 }
 0x228   :  { %v585_v1 = vadd.f32 %v580_v0, %v226_v61 }
 0x22a   :  { %v589_v3 = vmul.f32 0.5, %v585_v1 }
 0x22c   :  { %1854 = vtanh.f32 %v589_v3 }
 0x22d   :  { %1856 = vtanh.f32 %v585_v1 }
 0x22f   :  { %v582_v8 = vpop.f32.mrf.mxu3 }
 0x230   :  { %v586_v9 = vadd.f32 %v582_v8, %v228_v7 }
 0x232   :  { %v1855_v11 = vpop.eup %1854  ;;  %v590_v12 = vmul.f32 0.5, %v586_v9 }
 0x233   :  { %v593_v13 = vadd.f32 1.0, %v1855_v11  ;;  %v1857_v15 = vpop.eup %1856 }
 0x234   :  { %1858 = vtanh.f32 %v590_v12 }
 0x235   :  { %v595_v14 = vmul.f32 0.5, %v593_v13  ;;  %1860 = vtanh.f32 %v586_v9 }
 0x237   :  { %v597_v16 = vmul.f32 %v595_v14, %v491_v46  ;;  %v599_v17 = vmul.f32 %v1857_v15, %v595_v14  ;;  %v1724_v46 = vld [vmem:[#allocation8 + $0x18] sm:$0xff] }
 0x238   :  { %803 = vmatpush.bf16.msra.mxu2 %v1724_v46 }
 0x239   :  { %v601_v18 = vadd.f32 %v599_v17, %v597_v16 }
 0x23a   :  { %v1859_v19 = vpop.eup %1858 }
 0x23b   :  { %v594_v22 = vadd.f32 1.0, %v1859_v19  ;;  %1862 = vtanh.f32 %v601_v18  ;;  %v1861_v25 = vpop.eup %1860 }
 0x23d   :  { %v596_v23 = vmul.f32 0.5, %v594_v22 }
 0x23f   :  { %v598_v26 = vmul.f32 %v596_v23, %v492_v48  ;;  %v600_v27 = vmul.f32 %v1861_v25, %v596_v23  ;;  %v1723_v48 = vld [vmem:[#allocation8 + $0x10] sm:$0xff]  ;;  %v1736_v25 = vld [vmem:[#allocation8 + $0x38] sm:$0xff] }
 0x240   :  { %804 = vmatpush.bf16.msra.mxu2 %v1723_v48  ;;  %913 = vmatpush.bf16.msrb.mxu3 %v1736_v25 }
 0x241   :  { %v602_v29 = vadd.f32 %v600_v27, %v598_v26  ;;  %v1863_v30 = vpop.eup %1862  ;;  %v1735_v26 = vld [vmem:[#allocation8 + $0x30] sm:$0xff]  ;;  %v1734_v27 = vld [vmem:[#allocation8 + $0x28] sm:$0xff] }
 0x242   :  { %v605_v32 = vmul.f32 %v1863_v30, %v595_v14  ;;  %v235_v30 = vpop.f32.mrf.mxu0 }
 0x243   :  { %1864 = vtanh.f32 %v602_v29  ;;  %v1733_v29 = vld [vmem:[#allocation8 + $0x20] sm:$0xff] }
 0x244   :  { %v607_v35 = vpack.c.bf16 %v605_v32, %v605_v32  ;;  %805 = vmatpush.bf16.msra.mxu2 %v1722_v51  ;;  %914 = vmatpush.bf16.msrb.mxu3 %v1735_v26 }
 0x246   :  { %v633_v38 = vunpack.c.l.b16 %v607_v35 }
 0x248   :  { %806 = vmatpush.bf16.msra.mxu2 %v1721_v55  ;;  %915 = vmatpush.bf16.msrb.mxu3 %v1734_v27 }
 0x249   :  { %v1865_v33 = vpop.eup %1864 }
 0x24a   :  { %v606_v34 = vmul.f32 %v1865_v33, %v596_v23  ;;  %v236_v33 = vadd.f32 %v2101_v31, %v235_v30 }
 0x24c   :  { %v1774_v36 = vpack.c.bf16 %v606_v34, %v605_v32  ;;  %v608_v37 = vpack.c.bf16 %v606_v34, %v606_v34  ;;  %916 = vmatpush.bf16.msrb.mxu3 %v1733_v29 }
 0x24e   :  { %1775 = vst [vmem:[#allocation9 + $0x10] sm:$0xff] %v1774_v36   ;;  %v634_v39 = vunpack.c.l.b16 %v608_v37  ;;  %v1730_v37 = vld [vmem:[#allocation8 + $0x8] sm:$0xff] }
 0x250   :  { %v635_v40 = vpack.c.b16 %v634_v39, %v633_v38  ;;  %v237_v39 = vpop.f32.mrf.mxu0 }
 0x251   :  { %v238_v42 = vadd.f32 %v2101_v31, %v237_v39 }
 0x252   :  { %693 = vmatmul.bf16.vlgmr.msra.gmra.mxu1 %v635_v40  ;;  %v1677_v40 = vld [vmem:[#allocation3 + $0x28] sm:$0xff] }
 0x253   :  { %239 = vmatmul.bf16.gmra.mxu0 %v1677_v40 }
 0x2cf   :  { %v694_v49 = vpop.f32.mrf.mxu1 }
 0x2d0   :  { %v699_v50 = vadd.f32 %v694_v49, %v231_v47 }
 0x2d2   :  { %v703_v52 = vmul.f32 0.5, %v699_v50 }
 0x2d4   :  { %1866 = vtanh.f32 %v703_v52 }
 0x2d5   :  { %1868 = vtanh.f32 %v699_v50 }
 0x2d7   :  { %v696_v57 = vpop.f32.mrf.mxu1 }
 0x2d8   :  { %v700_v58 = vadd.f32 %v696_v57, %v233_v56 }
 0x2da   :  { %v1867_v59 = vpop.eup %1866  ;;  %v704_v60 = vmul.f32 0.5, %v700_v58 }
 0x2db   :  { %v707_v61 = vadd.f32 1.0, %v1867_v59  ;;  %v1869_v63 = vpop.eup %1868 }
 0x2dc   :  { %1870 = vtanh.f32 %v704_v60 }
 0x2dd   :  { %v709_v62 = vmul.f32 0.5, %v707_v61  ;;  %1872 = vtanh.f32 %v700_v58 }
 0x2df   :  { %v711_v0 = vmul.f32 %v709_v62, %v605_v32  ;;  %v713_v1 = vmul.f32 %v1869_v63, %v709_v62  ;;  %v1732_v32 = vld [vmem:[#allocation8 + $0x18] sm:$0xff] }
 0x2e0   :  { %917 = vmatpush.bf16.msrb.mxu3 %v1732_v32 }
 0x2e1   :  { %v715_v2 = vadd.f32 %v713_v1, %v711_v0 }
 0x2e2   :  { %v1871_v3 = vpop.eup %1870 }
 0x2e3   :  { %v708_v4 = vadd.f32 1.0, %v1871_v3  ;;  %1874 = vtanh.f32 %v715_v2  ;;  %v1873_v7 = vpop.eup %1872 }
 0x2e5   :  { %v710_v5 = vmul.f32 0.5, %v708_v4 }
 0x2e7   :  { %v712_v8 = vmul.f32 %v710_v5, %v606_v34  ;;  %v714_v9 = vmul.f32 %v1873_v7, %v710_v5  ;;  %v1731_v34 = vld [vmem:[#allocation8 + $0x10] sm:$0xff]  ;;  %v1744_v7 = vld [vmem:[#allocation8 + $0x38] sm:$0xff] }
 0x2e8   :  { %918 = vmatpush.bf16.msrb.mxu3 %v1731_v34  ;;  %1027 = vmatpush.bf16.msrb.mxu1 %v1744_v7 }
 0x2e9   :  { %v716_v11 = vadd.f32 %v714_v9, %v712_v8  ;;  %v1875_v12 = vpop.eup %1874  ;;  %v1743_v8 = vld [vmem:[#allocation8 + $0x30] sm:$0xff]  ;;  %v1742_v9 = vld [vmem:[#allocation8 + $0x28] sm:$0xff] }
 0x2ea   :  { %v719_v13 = vmul.f32 %v1875_v12, %v709_v62  ;;  %v240_v12 = vpop.f32.mrf.mxu0 }
 0x2eb   :  { %1876 = vtanh.f32 %v716_v11  ;;  %v1741_v11 = vld [vmem:[#allocation8 + $0x20] sm:$0xff] }
 0x2ec   :  { %v721_v16 = vpack.c.bf16 %v719_v13, %v719_v13  ;;  %919 = vmatpush.bf16.msrb.mxu3 %v1730_v37  ;;  %1028 = vmatpush.bf16.msrb.mxu1 %v1743_v8 }
 0x2ee   :  { %v747_v19 = vunpack.c.l.b16 %v721_v16 }
 0x2f0   :  { %920 = vmatpush.bf16.msrb.mxu3 %v1729_v41  ;;  %1029 = vmatpush.bf16.msrb.mxu1 %v1742_v9 }
 0x2f1   :  { %v1877_v14 = vpop.eup %1876 }
 0x2f2   :  { %v720_v15 = vmul.f32 %v1877_v14, %v710_v5  ;;  %v241_v14 = vadd.f32 %v2101_v31, %v240_v12 }
 0x2f4   :  { %v1779_v17 = vpack.c.bf16 %v720_v15, %v719_v13  ;;  %v722_v18 = vpack.c.bf16 %v720_v15, %v720_v15  ;;  %1030 = vmatpush.bf16.msrb.mxu1 %v1741_v11 }
 0x2f6   :  { %1780 = vst [vmem:[#allocation9 + $0x18] sm:$0xff] %v1779_v17   ;;  %v748_v22 = vunpack.c.l.b16 %v722_v18  ;;  %v1738_v18 = vld [vmem:[#allocation8 + $0x8] sm:$0xff] }
 0x2f8   :  { %v749_v23 = vpack.c.b16 %v748_v22, %v747_v19  ;;  %v242_v22 = vpop.f32.mrf.mxu0 }
 0x2f9   :  { %v243_v25 = vadd.f32 %v2101_v31, %v242_v22 }
 0x2fa   :  { %807 = vmatmul.bf16.vlgmr.msra.gmra.mxu2 %v749_v23  ;;  %v1737_v23 = vld [vmem:[#allocation8] sm:$0xff] }
 0x37d   :  { %v808_v35 = vpop.f32.mrf.mxu2 }
 0x37e   :  { %v813_v36 = vadd.f32 %v808_v35, %v236_v33 }
 0x380   :  { %v817_v38 = vmul.f32 0.5, %v813_v36 }
 0x382   :  { %1878 = vtanh.f32 %v817_v38 }
 0x383   :  { %1880 = vtanh.f32 %v813_v36 }
 0x385   :  { %v810_v43 = vpop.f32.mrf.mxu2 }
 0x386   :  { %v814_v44 = vadd.f32 %v810_v43, %v238_v42 }
 0x388   :  { %v1879_v45 = vpop.eup %1878  ;;  %v818_v46 = vmul.f32 0.5, %v814_v44 }
 0x389   :  { %v821_v47 = vadd.f32 1.0, %v1879_v45  ;;  %v1881_v49 = vpop.eup %1880 }
 0x38a   :  { %1882 = vtanh.f32 %v818_v46 }
 0x38b   :  { %v823_v48 = vmul.f32 0.5, %v821_v47  ;;  %1884 = vtanh.f32 %v814_v44 }
 0x38d   :  { %v825_v50 = vmul.f32 %v823_v48, %v719_v13  ;;  %v827_v51 = vmul.f32 %v1881_v49, %v823_v48  ;;  %v1740_v13 = vld [vmem:[#allocation8 + $0x18] sm:$0xff] }
 0x38e   :  { %1031 = vmatpush.bf16.msrb.mxu1 %v1740_v13 }
 0x38f   :  { %v829_v52 = vadd.f32 %v827_v51, %v825_v50 }
 0x390   :  { %v1883_v53 = vpop.eup %1882 }
 0x391   :  { %v822_v54 = vadd.f32 1.0, %v1883_v53  ;;  %1886 = vtanh.f32 %v829_v52  ;;  %v1885_v56 = vpop.eup %1884 }
 0x393   :  { %v824_v55 = vmul.f32 0.5, %v822_v54 }
 0x395   :  { %v826_v57 = vmul.f32 %v824_v55, %v720_v15  ;;  %v828_v58 = vmul.f32 %v1885_v56, %v824_v55  ;;  %v1739_v15 = vld [vmem:[#allocation8 + $0x10] sm:$0xff] }
 0x396   :  { %1032 = vmatpush.bf16.msrb.mxu1 %v1739_v15  ;;  %v1751_v56 = vld [vmem:[#allocation8 + $0x30] sm:$0xff] }
 0x397   :  { %v830_v59 = vadd.f32 %v828_v58, %v826_v57  ;;  %v1887_v60 = vpop.eup %1886  ;;  %v1750_v57 = vld [vmem:[#allocation8 + $0x28] sm:$0xff]  ;;  %v1749_v58 = vld [vmem:[#allocation8 + $0x20] sm:$0xff] }
 0x398   :  { %v833_v61 = vmul.f32 %v1887_v60, %v823_v48  ;;  %v1747_v60 = vld [vmem:[#allocation8 + $0x10] sm:$0xff] }
 0x399   :  { %1888 = vtanh.f32 %v830_v59  ;;  %v1748_v59 = vld [vmem:[#allocation8 + $0x18] sm:$0xff] }
 0x39a   :  { %v835_v0 = vpack.c.bf16 %v833_v61, %v833_v61  ;;  %1033 = vmatpush.bf16.msrb.mxu1 %v1738_v18 }
 0x39c   :  { %v861_v3 = vunpack.c.l.b16 %v835_v0  ;;  %v1746_v0 = vld [vmem:[#allocation8 + $0x8] sm:$0xff] }
 0x39e   :  { %1034 = vmatpush.bf16.msrb.mxu1 %v1737_v23 }
 0x39f   :  { %v1889_v62 = vpop.eup %1888 }
 0x3a0   :  { %v834_v63 = vmul.f32 %v1889_v62, %v824_v55  ;;  %v1752_v55 = vld [vmem:[#allocation8 + $0x38] sm:$0xff] }
 0x3a1   :  { %1141 = vmatpush.bf16.msrb.mxu2 %v1752_v55 }
 0x3a2   :  { %v1784_v1 = vpack.c.bf16 %v834_v63, %v833_v61  ;;  %v836_v2 = vpack.c.bf16 %v834_v63, %v834_v63 }
 0x3a4   :  { %1785 = vst [vmem:[#allocation9 + $0x20] sm:$0xff] %v1784_v1   ;;  %v862_v4 = vunpack.c.l.b16 %v836_v2  ;;  %v1745_v2 = vld [vmem:[#allocation8] sm:$0xff] }
 0x3a5   :  { %1142 = vmatpush.bf16.msrb.mxu2 %v1751_v56 }
 0x3a6   :  { %v863_v5 = vpack.c.b16 %v862_v4, %v861_v3  ;;  %v248_v3 = vadd.f32 %v2101_v31, %v2092_v21 }
 0x3a8   :  { %921 = vmatmul.bf16.vlgmr.msrb.gmra.mxu3 %v863_v5 }
 0x3a9   :  { %1143 = vmatpush.bf16.msrb.mxu2 %v1750_v57 }
 0x3ad   :  { %1144 = vmatpush.bf16.msrb.mxu2 %v1749_v58 }
 0x3b1   :  { %1145 = vmatpush.bf16.msrb.mxu2 %v1748_v59 }
 0x3b5   :  { %1146 = vmatpush.bf16.msrb.mxu2 %v1747_v60 }
 0x3b9   :  { %1147 = vmatpush.bf16.msrb.mxu2 %v1746_v0 }
 0x3bd   :  { %1148 = vmatpush.bf16.msrb.mxu2 %v1745_v2 }
 0x42b   :  { %v922_v16 = vpop.f32.mrf.mxu3 }
 0x42c   :  { %v927_v17 = vadd.f32 %v922_v16, %v241_v14 }
 0x42e   :  { %v931_v19 = vmul.f32 0.5, %v927_v17 }
 0x430   :  { %1890 = vtanh.f32 %v931_v19 }
 0x431   :  { %1892 = vtanh.f32 %v927_v17 }
 0x433   :  { %v924_v26 = vpop.f32.mrf.mxu3 }
 0x434   :  { %v928_v27 = vadd.f32 %v924_v26, %v243_v25 }
 0x436   :  { %v1891_v29 = vpop.eup %1890  ;;  %v932_v30 = vmul.f32 0.5, %v928_v27 }
 0x437   :  { %v935_v32 = vadd.f32 1.0, %v1891_v29  ;;  %v1893_v34 = vpop.eup %1892 }
 0x438   :  { %1894 = vtanh.f32 %v932_v30 }
 0x439   :  { %v937_v33 = vmul.f32 0.5, %v935_v32  ;;  %1896 = vtanh.f32 %v928_v27 }
 0x43b   :  { %v939_v35 = vmul.f32 %v937_v33, %v833_v61  ;;  %v941_v36 = vmul.f32 %v1893_v34, %v937_v33  ;;  %v246_v61 = vadd.f32 %v2101_v31, %v2090_v20 }
 0x43d   :  { %v943_v37 = vadd.f32 %v941_v36, %v939_v35  ;;  %v1760_v36 = vld [vmem:[#allocation8 + $0x38] sm:$0xff] }
 0x43e   :  { %v1895_v38 = vpop.eup %1894  ;;  %1255 = vmatpush.bf16.msra.mxu3 %v1760_v36 }
 0x43f   :  { %v936_v39 = vadd.f32 1.0, %v1895_v38  ;;  %1898 = vtanh.f32 %v943_v37  ;;  %v1897_v41 = vpop.eup %1896  ;;  %v1759_v37 = vld [vmem:[#allocation8 + $0x30] sm:$0xff]  ;;  %v1758_v38 = vld [vmem:[#allocation8 + $0x28] sm:$0xff] }
 0x441   :  { %v938_v40 = vmul.f32 0.5, %v936_v39  ;;  %v1757_v39 = vld [vmem:[#allocation8 + $0x20] sm:$0xff] }
 0x442   :  { %1256 = vmatpush.bf16.msra.mxu3 %v1759_v37 }
 0x443   :  { %v940_v42 = vmul.f32 %v938_v40, %v834_v63  ;;  %v942_v43 = vmul.f32 %v1897_v41, %v938_v40  ;;  %v1755_v41 = vld [vmem:[#allocation8 + $0x10] sm:$0xff] }
 0x445   :  { %v944_v44 = vadd.f32 %v942_v43, %v940_v42  ;;  %v1899_v45 = vpop.eup %1898  ;;  %v251_v42 = vadd.f32 %v2101_v31, %v2094_v24 }
 0x446   :  { %v947_v46 = vmul.f32 %v1899_v45, %v937_v33  ;;  %1257 = vmatpush.bf16.msra.mxu3 %v1758_v38  ;;  %v1754_v45 = vld [vmem:[#allocation8 + $0x8] sm:$0xff] }
 0x447   :  { %1900 = vtanh.f32 %v944_v44 }
 0x448   :  { %v949_v49 = vpack.c.bf16 %v947_v46, %v947_v46 }
 0x44a   :  { %v975_v52 = vunpack.c.l.b16 %v949_v49  ;;  %1258 = vmatpush.bf16.msra.mxu3 %v1757_v39 }
 0x44d   :  { %v1901_v47 = vpop.eup %1900 }
 0x44e   :  { %v948_v48 = vmul.f32 %v1901_v47, %v938_v40  ;;  %v1756_v40 = vld [vmem:[#allocation8 + $0x18] sm:$0xff]  ;;  %v1753_v47 = vld [vmem:[#allocation8] sm:$0xff] }
 0x44f   :  { %1259 = vmatpush.bf16.msra.mxu3 %v1756_v40 }
 0x450   :  { %v1789_v50 = vpack.c.bf16 %v948_v48, %v947_v46  ;;  %v950_v51 = vpack.c.bf16 %v948_v48, %v948_v48 }
 0x452   :  { %1790 = vst [vmem:[#allocation9 + $0x28] sm:$0xff] %v1789_v50   ;;  %v976_v53 = vunpack.c.l.b16 %v950_v51 }
 0x453   :  { %1260 = vmatpush.bf16.msra.mxu3 %v1755_v41 }
 0x454   :  { %v977_v54 = vpack.c.b16 %v976_v53, %v975_v52 }
 0x456   :  { %1035 = vmatmul.bf16.vlgmr.msrb.gmra.mxu1 %v977_v54 }
 0x457   :  { %1261 = vmatpush.bf16.msra.mxu3 %v1754_v45 }
 0x45b   :  { %1262 = vmatpush.bf16.msra.mxu3 %v1753_v47 }
 0x4d3   :  { %v1036_v62 = vpop.f32.mrf.mxu1 }
 0x4d4   :  { %v1041_v63 = vadd.f32 %v1036_v62, %v246_v61 }
 0x4d6   :  { %v1045_v1 = vmul.f32 0.5, %v1041_v63 }
 0x4d8   :  { %1902 = vtanh.f32 %v1045_v1 }
 0x4d9   :  { %1904 = vtanh.f32 %v1041_v63 }
 0x4db   :  { %v1038_v4 = vpop.f32.mrf.mxu1 }
 0x4dc   :  { %v1042_v5 = vadd.f32 %v1038_v4, %v248_v3 }
 0x4de   :  { %v1903_v7 = vpop.eup %1902  ;;  %v1046_v8 = vmul.f32 0.5, %v1042_v5 }
 0x4df   :  { %v1049_v9 = vadd.f32 1.0, %v1903_v7  ;;  %v1905_v11 = vpop.eup %1904 }
 0x4e0   :  { %1906 = vtanh.f32 %v1046_v8 }
 0x4e1   :  { %v1051_v20 = vmul.f32 0.5, %v1049_v9  ;;  %1908 = vtanh.f32 %v1042_v5 }
 0x4e3   :  { %v1053_v12 = vmul.f32 %v1051_v20, %v947_v46  ;;  %v1055_v13 = vmul.f32 %v1905_v11, %v1051_v20  ;;  %v256_v11 = vadd.f32 %v2101_v31, %v2105_v6 }
 0x4e5   :  { %v1057_v14 = vadd.f32 %v1055_v13, %v1053_v12 }
 0x4e6   :  { %v1907_v15 = vpop.eup %1906 }
 0x4e7   :  { %v1050_v16 = vadd.f32 1.0, %v1907_v15  ;;  %1910 = vtanh.f32 %v1057_v14  ;;  %v1909_v18 = vpop.eup %1908  ;;  %v258_v15 = vadd.f32 %v2101_v31, %v2107_v10 }
 0x4e9   :  { %v1052_v17 = vmul.f32 0.5, %v1050_v16 }
 0x4eb   :  { %v1054_v21 = vmul.f32 %v1052_v17, %v948_v48  ;;  %v1056_v19 = vmul.f32 %v1909_v18, %v1052_v17  ;;  %v253_v48 = vadd.f32 %v2101_v31, %v2096_v28 }
 0x4ed   :  { %v1058_v22 = vadd.f32 %v1056_v19, %v1054_v21  ;;  %v1911_v23 = vpop.eup %1910 }
 0x4ee   :  { %v1061_v25 = vmul.f32 %v1911_v23, %v1051_v20 }
 0x4ef   :  { %1912 = vtanh.f32 %v1058_v22 }
 0x4f0   :  { %v1063_v29 = vpack.c.bf16 %v1061_v25, %v1061_v25 }
 0x4f2   :  { %v1089_v33 = vunpack.c.l.b16 %v1063_v29 }
 0x4f5   :  { %v1913_v26 = vpop.eup %1912 }
 0x4f6   :  { %v1062_v27 = vmul.f32 %v1913_v26, %v1052_v17 }
 0x4f8   :  { %v1794_v30 = vpack.c.bf16 %v1062_v27, %v1061_v25  ;;  %v1064_v32 = vpack.c.bf16 %v1062_v27, %v1062_v27 }
 0x4fa   :  { %1795 = vst [vmem:[#allocation9 + $0x30] sm:$0xff] %v1794_v30   ;;  %v1090_v34 = vunpack.c.l.b16 %v1064_v32 }
 0x4fc   :  { %v1091_v35 = vpack.c.b16 %v1090_v34, %v1089_v33 }
 0x4fe   :  { %1149 = vmatmul.bf16.vlgmr.msrb.gmra.mxu2 %v1091_v35 }
 0x581   :  { %v1150_v43 = vpop.f32.mrf.mxu2 }
 0x582   :  { %v1155_v44 = vadd.f32 %v1150_v43, %v251_v42 }
 0x584   :  { %v1159_v46 = vmul.f32 0.5, %v1155_v44 }
 0x586   :  { %1914 = vtanh.f32 %v1159_v46 }
 0x587   :  { %1916 = vtanh.f32 %v1155_v44 }
 0x589   :  { %v1152_v49 = vpop.f32.mrf.mxu2 }
 0x58a   :  { %v1156_v50 = vadd.f32 %v1152_v49, %v253_v48 }
 0x58c   :  { %v1915_v51 = vpop.eup %1914  ;;  %v1160_v52 = vmul.f32 0.5, %v1156_v50 }
 0x58d   :  { %v1163_v53 = vadd.f32 1.0, %v1915_v51  ;;  %v1917_v54 = vpop.eup %1916 }
 0x58e   :  { %1918 = vtanh.f32 %v1160_v52 }
 0x58f   :  { %v1165_v24 = vmul.f32 0.5, %v1163_v53  ;;  %1920 = vtanh.f32 %v1156_v50 }
 0x591   :  { %v1167_v55 = vmul.f32 %v1165_v24, %v1061_v25  ;;  %v1169_v56 = vmul.f32 %v1917_v54, %v1165_v24 }
 0x593   :  { %v1171_v57 = vadd.f32 %v1169_v56, %v1167_v55 }
 0x594   :  { %v1919_v58 = vpop.eup %1918 }
 0x595   :  { %v1164_v59 = vadd.f32 1.0, %v1919_v58  ;;  %1922 = vtanh.f32 %v1171_v57  ;;  %v1921_v61 = vpop.eup %1920 }
 0x597   :  { %v1166_v60 = vmul.f32 0.5, %v1164_v59 }
 0x599   :  { %v1168_v28 = vmul.f32 %v1166_v60, %v1062_v27  ;;  %v1170_v62 = vmul.f32 %v1921_v61, %v1166_v60 }
 0x59b   :  { %v1172_v63 = vadd.f32 %v1170_v62, %v1168_v28  ;;  %v1923_v0 = vpop.eup %1922 }
 0x59c   :  { %v1175_v1 = vmul.f32 %v1923_v0, %v1165_v24 }
 0x59d   :  { %1924 = vtanh.f32 %v1172_v63 }
 0x59e   :  { %v1177_v4 = vpack.c.bf16 %v1175_v1, %v1175_v1 }
 0x5a0   :  { %v1203_v8 = vunpack.c.l.b16 %v1177_v4 }
 0x5a3   :  { %v1925_v2 = vpop.eup %1924 }
 0x5a4   :  { %v1176_v3 = vmul.f32 %v1925_v2, %v1166_v60 }
 0x5a6   :  { %v1799_v5 = vpack.c.bf16 %v1176_v3, %v1175_v1  ;;  %v1178_v7 = vpack.c.bf16 %v1176_v3, %v1176_v3 }
 0x5a8   :  { %1800 = vst [vmem:[#allocation9 + $0x38] sm:$0xff] %v1799_v5   ;;  %v1204_v9 = vunpack.c.l.b16 %v1178_v7 }
 0x5aa   :  { %v1205_v20 = vpack.c.b16 %v1204_v9, %v1203_v8 }
 0x5ac   :  { %1263 = vmatmul.bf16.vlgmr.msra.gmra.mxu3 %v1205_v20 }
 0x62f   :  { %v1264_v12 = vpop.f32.mrf.mxu3 }
 0x630   :  { %v1269_v13 = vadd.f32 %v1264_v12, %v256_v11 }
 0x632   :  { %v1273_v14 = vmul.f32 0.5, %v1269_v13 }
 0x634   :  { %1926 = vtanh.f32 %v1273_v14 }
 0x635   :  { %1928 = vtanh.f32 %v1269_v13 }
 0x637   :  { %v1266_v16 = vpop.f32.mrf.mxu3 }
 0x638   :  { %v1270_v17 = vadd.f32 %v1266_v16, %v258_v15 }
 0x63a   :  { %v1927_v18 = vpop.eup %1926  ;;  %v1274_v21 = vmul.f32 0.5, %v1270_v17 }
 0x63b   :  { %v1277_v19 = vadd.f32 1.0, %v1927_v18  ;;  %v1929_v23 = vpop.eup %1928 }
 0x63c   :  { %1930 = vtanh.f32 %v1274_v21 }
 0x63d   :  { %v1279_v22 = vmul.f32 0.5, %v1277_v19  ;;  %1932 = vtanh.f32 %v1270_v17 }
 0x63f   :  { %v1281_v25 = vmul.f32 %v1279_v22, %v1175_v1  ;;  %v1283_v26 = vmul.f32 %v1929_v23, %v1279_v22 }
 0x641   :  { %v1285_v29 = vadd.f32 %v1283_v26, %v1281_v25 }
 0x642   :  { %v1931_v6 = vpop.eup %1930 }
 0x643   :  { %v1278_v27 = vadd.f32 1.0, %v1931_v6  ;;  %v1933_v32 = vpop.eup %1932  ;;  %1934 = vtanh.f32 %v1285_v29 }
 0x645   :  { %v1280_v30 = vmul.f32 0.5, %v1278_v27 }
 0x647   :  { %v1282_v33 = vmul.f32 %v1280_v30, %v1176_v3  ;;  %v1284_v34 = vmul.f32 %v1933_v32, %v1280_v30 }
 0x649   :  { %v1286_v31 = vadd.f32 %v1284_v34, %v1282_v33  ;;  %v1935_v10 = vpop.eup %1934 }
 0x64a   :  { %v1289_v36 = vmul.f32 %v1935_v10, %v1279_v22 }
 0x64b   :  { %1936 = vtanh.f32 %v1286_v31 }
 0x651   :  { %v1937_v35 = vpop.eup %1936 }
 0x652   :  { %v1290_v37 = vmul.f32 %v1937_v35, %v1280_v30 }
 0x654   :  { %v1804_v38 = vpack.c.bf16 %v1290_v37, %v1289_v36 }
 0x656   :  { %1805 = vst [vmem:[#allocation9 + $0x40] sm:$0xff] %v1804_v38  }
 0x657   :  { %1308 = dma.vmem_to_hbm [thread:$0]  %s1301_s5, 1152, %s1303_s8, [#allocation5], %s2041_s23, %s2041_s23, %s2042_s24  }
 0x658   :  { %2038 = dma.done.wait [#allocation5], 1152  }
 0x659   :  { %2039 = vsyncadd [#allocation5], 4294966144 }
 0x65a   :  { %1313 = vsyncpa [#allocation4], 1 }
 0x65b   :  { %1314 = vsyncpa [#allocation7], 1 }
 0x65c   :  { %1315 = vsyncpa [#allocation5], 1 }

</bundles_post_ra>
